<compile_context>
chip_gen: v7x
topology: tpu7x:2x2x1
jax: 0.10.0
libtpu: 0.0.40
codegen_flags: <defaults>
</compile_context>

<pallas_src>
import functools
import math

import jax
import jax.numpy as jnp
from jax import lax
from jax.experimental import pallas as pl
from jax.experimental.pallas import tpu as pltpu


# ----------------------------------------------------------------------------
# Pallas kernels
# ----------------------------------------------------------------------------
def _layer_norm(v, gamma, eps=1e-5):
    # audiolm LayerNorm: learnable gamma, beta fixed to zero.  f32 statistics.
    mu = jnp.mean(v, axis=-1, keepdims=True)
    var = jnp.mean((v - mu) ** 2, axis=-1, keepdims=True)
    return (v - mu) * lax.rsqrt(var + eps) * gamma


def transformer_layer_kernel(
    x_ref, bias_ref,
    ln1_g_ref, wq_ref, wk_ref, wv_ref, wo_ref,
    ln2_g_ref, wval_ref, wgate_ref, w2_ref,
    o_ref, *, heads, dim_head,
):
    """One pre-LN transformer block (causal MQA + GEGLU FF) for one batch row.

    x_ref    : (1, N, D)   bf16 activations
    bias_ref : (H*N, N)    bf16 rel-pos bias with the causal -inf already folded in
    wq_ref   : (H, D, Dh)  per-head query projections (leading-dim indexed)
    wk_ref   : (D, Dh), wv_ref: (D, Dh)  shared multi-query K/V projections
    wo_ref   : (H, Dh, D)  per-head output projections
    """
    f32 = jnp.float32
    cdt = jnp.bfloat16                              # MXU operand dtype
    x = x_ref[0].astype(f32)                        # (N, D) f32 residual stream
    N = x.shape[0]

    # ---------------- attention branch ----------------
    h = _layer_norm(x, ln1_g_ref[...]).astype(cdt)  # (N, D) bf16

    # shared K / V (multi-query): single matmuls with full contraction depth D.
    k = jnp.dot(h, wk_ref[...], preferred_element_type=f32).astype(cdt)   # (N, Dh)
    v = jnp.dot(h, wv_ref[...], preferred_element_type=f32).astype(cdt)   # (N, Dh)

    # per-head Q projections (contraction = D), stacked along the sublane/major
    # axis -> (H*N, Dh).  No lane-granular slicing or concatenation, no reshape.
    q = jnp.concatenate(
        [jnp.dot(h, wq_ref[i], preferred_element_type=f32) for i in range(heads)],
        axis=0)                                                           # (H*N, Dh)
    q = (q * (dim_head ** -0.5)).astype(cdt)        # scale folded into q

    # ONE score matmul for all heads: M = H*N rows fed to the MXU.
    sim = lax.dot_general(q, k, (((1,), (1,)), ((), ())),
                          preferred_element_type=f32)                     # (H*N, N)
    # rel-pos bias (+ causal -1e30 fill) precomputed outside, bf16 -> f32 add.
    sim = sim + bias_ref[...].astype(f32)

    # softmax with f32 statistics; reciprocal goes to the EUP slot.
    sim = sim - jnp.max(sim, axis=-1, keepdims=True)
    p = jnp.exp(sim)
    p = p * pl.reciprocal(jnp.sum(p, axis=-1, keepdims=True), approx=True)

    # ONE weighted-value matmul for all heads.
    out = jnp.dot(p.astype(cdt), v, preferred_element_type=f32)           # (H*N, Dh)

    # output projection: per-head (Dh, D) weights, accumulated in f32.
    # (sublane-only slices; avoids a lane-granular concat / relayout of the
    #  head outputs, which in-kernel reshapes would otherwise require.)
    attn = jnp.dot(out[0:N].astype(cdt), wo_ref[0], preferred_element_type=f32)
    for i in range(1, heads):
        attn = attn + jnp.dot(out[i * N:(i + 1) * N].astype(cdt), wo_ref[i],
                              preferred_element_type=f32)
    x = x + attn

    # ---------------- feed-forward branch (GEGLU) ----------------
    h2 = _layer_norm(x, ln2_g_ref[...]).astype(cdt)
    u = jnp.dot(h2, wval_ref[...], preferred_element_type=f32)            # (N, F)
    g = jnp.dot(h2, wgate_ref[...], preferred_element_type=f32)           # (N, F)
    # tanh-approx GELU (PyTorch uses exact erf GELU; difference is ~1e-3),
    # gate math kept in f32.
    ff = (u * jax.nn.gelu(g, approximate=True)).astype(cdt)
    ff = jnp.dot(ff, w2_ref[...], preferred_element_type=f32)             # (N, D)

    o_ref[0] = (x + ff).astype(o_ref.dtype)


def to_logits_kernel(x_ref, ln_g_ref, w_ref, b_ref, o_ref):
    """Final transformer LayerNorm + to_logits Linear (vocab padded to 128)."""
    f32 = jnp.float32
    x = x_ref[0].astype(f32)                        # (N, D)
    h = _layer_norm(x, ln_g_ref[...])
    o_ref[0] = (jnp.dot(h.astype(w_ref.dtype), w_ref[...],
                        preferred_element_type=f32) + b_ref[...])


# ----------------------------------------------------------------------------
# pallas_call wrappers
# ----------------------------------------------------------------------------
def _const_spec(a):
    # grid-invariant (weight / bias) input: whole array every grid step.
    return pl.BlockSpec(a.shape, lambda b, _nd=a.ndim: (0,) * _nd)


def run_transformer_layer(x, bias, p, *, heads, dim_head):
    B, N, D = x.shape
    kernel = functools.partial(transformer_layer_kernel, heads=heads, dim_head=dim_head)
    return pl.pallas_call(
        kernel,
        out_shape=jax.ShapeDtypeStruct((B, N, D), x.dtype),
        grid=(B,),
        in_specs=[
            pl.BlockSpec((1, N, D), lambda b: (b, 0, 0)),   # x, per-batch row
            _const_spec(bias),
            _const_spec(p["ln1_g"]),
            _const_spec(p["wq"]),
            _const_spec(p["wk"]),
            _const_spec(p["wv"]),
            _const_spec(p["wo"]),
            _const_spec(p["ln2_g"]),
            _const_spec(p["w_val"]),
            _const_spec(p["w_gate"]),
            _const_spec(p["w2"]),
        ],
        out_specs=pl.BlockSpec((1, N, D), lambda b: (b, 0, 0)),
        compiler_params=pltpu.CompilerParams(dimension_semantics=("parallel",)),
    )(x, bias, p["ln1_g"], p["wq"], p["wk"], p["wv"], p["wo"],
      p["ln2_g"], p["w_val"], p["w_gate"], p["w2"])


def run_to_logits(x, ln_g, w, b):
    B, N, D = x.shape
    Vp = w.shape[1]                                  # padded (lane-dense) vocab
    return pl.pallas_call(
        to_logits_kernel,
        out_shape=jax.ShapeDtypeStruct((B, N, Vp), jnp.float32),
        grid=(B,),
        in_specs=[
            pl.BlockSpec((1, N, D), lambda bb: (bb, 0, 0)),
            _const_spec(ln_g),
            _const_spec(w),
            _const_spec(b),
        ],
        out_specs=pl.BlockSpec((1, N, Vp), lambda bb: (bb, 0, 0)),
        compiler_params=pltpu.CompilerParams(dimension_semantics=("parallel",)),
    )(x, ln_g, w, b)


# ----------------------------------------------------------------------------
# Glue: rel-pos bias buckets (T5 causal style) with the causal mask folded in.
# Computed once per forward, shared by every layer, stored bf16, flattened to
# (H*N, N) so it matches the head-batched (H*N, N) score layout in-kernel.
# ----------------------------------------------------------------------------
def build_attn_bias(emb, n, heads, *, num_buckets=32, max_distance=128):
    pos = jnp.arange(n)
    rel = pos[None, :] - pos[:, None]               # j - i
    npos = jnp.maximum(-rel, 0)                     # causal bucketing
    max_exact = num_buckets // 2
    is_small = npos < max_exact
    val_large = max_exact + (
        jnp.log(npos.astype(jnp.float32) / max_exact + 1e-6)
        / math.log(max_distance / max_exact)
        * (num_buckets - max_exact)
    ).astype(jnp.int32)
    val_large = jnp.minimum(val_large, num_buckets - 1)
    bucket = jnp.where(is_small, npos, val_large)   # (n, n) int32
    values = emb[bucket]                            # (n, n, H)
    bias = jnp.transpose(values, (2, 0, 1))         # (H, n, n)
    causal = pos[None, :] <= pos[:, None]           # key j visible to query i
    bias = jnp.where(causal[None, :, :], bias, -1e30)
    return bias.reshape(heads * n, n).astype(jnp.bfloat16)


# ----------------------------------------------------------------------------
# SemanticTransformer forward (ids-only, unconditional path)
# ----------------------------------------------------------------------------
def semantic_transformer_forward(ids, params, *, heads, dim_head, vocab_size):
    B, n = ids.shape
    D = params["start_token"].shape[0]

    # embedding lookup + prepend start token (glue)
    tokens = params["semantic_embedding"][ids]                          # (B, n, D)
    start = jnp.broadcast_to(params["start_token"][None, None, :], (B, 1, D))
    x = jnp.concatenate([start, tokens], axis=1).astype(jnp.bfloat16)   # (B, N, D)
    N = n + 1

    # grad_shrink: x*alpha + detach(x)*(1-alpha) == x in the forward value
    # (identity here; only the backward pass differs)

    bias = build_attn_bias(params["rel_pos_emb"], N, heads)             # (H*N, N)

    for layer_p in params["layers"]:
        x = run_transformer_layer(x, bias, layer_p, heads=heads, dim_head=dim_head)

    logits_padded = run_to_logits(x, params["final_ln_g"],
                                  params["to_logits_w"], params["to_logits_b"])
    return logits_padded[:, :, :vocab_size]                             # (B, N, V+1)


# ----------------------------------------------------------------------------
# Deterministic parameter construction (bf16 weights, f32 norms / biases)
# ----------------------------------------------------------------------------
def make_params(key, *, dim, depth, num_semantic_tokens, heads, dim_head,
                num_buckets=32, ff_inner=None):
    ff_inner = ff_inner if ff_inner is not None else dim * 2  # GEGLU inner dim
    V1 = num_semantic_tokens + 1
    Vp = ((V1 + 127) // 128) * 128           # pad vocab for lane-dense stores
    wdt = jnp.bfloat16

    def nrm(k, shape, scale=0.02, dtype=wdt):
        return (jax.random.normal(k, shape, jnp.float32) * scale).astype(dtype)

    keys = iter(jax.random.split(key, 8 + depth * 6))

    w_logits = jnp.zeros((dim, Vp), jnp.float32)
    w_logits = w_logits.at[:, :V1].set(
        jax.random.normal(next(keys), (dim, V1), jnp.float32) * 0.02)

    params = {
        "start_token": jax.random.normal(next(keys), (dim,), jnp.float32),
        "semantic_embedding": jax.random.normal(next(keys), (V1, dim), jnp.float32),
        "rel_pos_emb": nrm(next(keys), (num_buckets, heads), dtype=jnp.float32),
        "final_ln_g": jnp.ones((1, dim), jnp.float32),
        "to_logits_w": w_logits.astype(wdt),
        "to_logits_b": jnp.zeros((1, Vp), jnp.float32),
        "layers": [],
    }
    for _ in range(depth):
        params["layers"].append({
            "ln1_g": jnp.ones((1, dim), jnp.float32),
            "wq": nrm(next(keys), (heads, dim, dim_head)),   # per-head query proj
            "wk": nrm(next(keys), (dim, dim_head)),          # multi-query: 1 KV head
            "wv": nrm(next(keys), (dim, dim_head)),
            "wo": nrm(next(keys), (heads, dim_head, dim)),   # per-head output proj
            "ln2_g": jnp.ones((1, dim), jnp.float32),
            "w_val": nrm(next(keys), (dim, ff_inner)),       # GEGLU value
            "w_gate": nrm(next(keys), (dim, ff_inner)),      # GEGLU gate
            "w2": nrm(next(keys), (ff_inner, dim)),
        })
    return params


# ----------------------------------------------------------------------------
if __name__ == "__main__":
    # small config consistent with the module (heads/dim_head = audiolm defaults)
    DIM = 128
    DEPTH = 2
    NUM_SEMANTIC_TOKENS = 16          # vocab = 17 (includes eos)
    HEADS = 8
    DIM_HEAD = 64
    BATCH = 2
    SEQ = 15                          # +1 start token -> N = 16 (sublane aligned)

    root = jax.random.PRNGKey(0)
    k_params, k_ids = jax.random.split(root)

    params = make_params(
        k_params, dim=DIM, depth=DEPTH,
        num_semantic_tokens=NUM_SEMANTIC_TOKENS,
        heads=HEADS, dim_head=DIM_HEAD,
    )
    ids = jax.random.randint(k_ids, (BATCH, SEQ), 0, NUM_SEMANTIC_TOKENS + 1)

    # TODO(synk): T5 text conditioning (embed_text / proj_text_embed / cross-attn),
    # classifier-free guidance and kv-cache incremental decoding are not
    # implemented (unconditional ids-only path).
    logits = semantic_transformer_forward(
        ids, params, heads=HEADS, dim_head=DIM_HEAD,
        vocab_size=NUM_SEMANTIC_TOKENS + 1)
    logits = jax.block_until_ready(logits)

    assert logits.shape == (BATCH, SEQ + 1, NUM_SEMANTIC_TOKENS + 1), logits.shape
    assert bool(jnp.all(jnp.isfinite(logits)))
    print("KERNEL_OK")
</pallas_src>

<mosaic_0001>
module attributes {stable_mosaic.version = 11 : i64} {
  func.func @transformer_layer_kernel(%arg0: i32, %arg1: memref<1x16x128xbf16, #tpu.memory_space<vmem>>, %arg2: memref<128x16xbf16, #tpu.memory_space<vmem>>, %arg3: memref<1x128xf32, #tpu.memory_space<vmem>>, %arg4: memref<8x128x64xbf16, #tpu.memory_space<vmem>>, %arg5: memref<128x64xbf16, #tpu.memory_space<vmem>>, %arg6: memref<128x64xbf16, #tpu.memory_space<vmem>>, %arg7: memref<8x64x128xbf16, #tpu.memory_space<vmem>>, %arg8: memref<1x128xf32, #tpu.memory_space<vmem>>, %arg9: memref<128x256xbf16, #tpu.memory_space<vmem>>, %arg10: memref<128x256xbf16, #tpu.memory_space<vmem>>, %arg11: memref<256x128xbf16, #tpu.memory_space<vmem>>, %arg12: memref<1x16x128xbf16, #tpu.memory_space<vmem>>) attributes {dimension_semantics = [#tpu.dimension_semantics<parallel>], iteration_bounds = array<i64: 2>, scalar_prefetch = 0 : i64, scratch_operands = 0 : i64, tpu.core_type = #tpu.core_type<tc>, window_params = [{transform_indices = @transform_0, window_bounds = array<i64: 1, 16, 128>}, {pipeline_mode = #tpu.pipeline_mode<synchronous>, transform_indices = @transform_1, window_bounds = array<i64: 128, 16>}, {pipeline_mode = #tpu.pipeline_mode<synchronous>, transform_indices = @transform_2, window_bounds = array<i64: 1, 128>}, {pipeline_mode = #tpu.pipeline_mode<synchronous>, transform_indices = @transform_3, window_bounds = array<i64: 8, 128, 64>}, {pipeline_mode = #tpu.pipeline_mode<synchronous>, transform_indices = @transform_4, window_bounds = array<i64: 128, 64>}, {pipeline_mode = #tpu.pipeline_mode<synchronous>, transform_indices = @transform_5, window_bounds = array<i64: 128, 64>}, {pipeline_mode = #tpu.pipeline_mode<synchronous>, transform_indices = @transform_6, window_bounds = array<i64: 8, 64, 128>}, {pipeline_mode = #tpu.pipeline_mode<synchronous>, transform_indices = @transform_7, window_bounds = array<i64: 1, 128>}, {pipeline_mode = #tpu.pipeline_mode<synchronous>, transform_indices = @transform_8, window_bounds = array<i64: 128, 256>}, {pipeline_mode = #tpu.pipeline_mode<synchronous>, transform_indices = @transform_9, window_bounds = array<i64: 128, 256>}, {pipeline_mode = #tpu.pipeline_mode<synchronous>, transform_indices = @transform_10, window_bounds = array<i64: 256, 128>}, {transform_indices = @transform_11, window_bounds = array<i64: 1, 16, 128>}]} {
    %c0 = arith.constant 0 : index
    %c0_0 = arith.constant 0 : index
    %c0_1 = arith.constant 0 : index
    %0 = vector.load %arg1[%c0, %c0_0, %c0_1] : memref<1x16x128xbf16, #tpu.memory_space<vmem>>, vector<1x16x128xbf16>
    %1 = vector.shape_cast %0 : vector<1x16x128xbf16> to vector<16x128xbf16>
    %2 = arith.extf %1 : vector<16x128xbf16> to vector<16x128xf32>
    %c0_2 = arith.constant 0 : index
    %c0_3 = arith.constant 0 : index
    %3 = vector.load %arg3[%c0_2, %c0_3] : memref<1x128xf32, #tpu.memory_space<vmem>>, vector<1x128xf32>
    %cst = arith.constant dense<0.000000e+00> : vector<16xf32>
    %4 = vector.multi_reduction <add>, %2, %cst [1] : vector<16x128xf32> to vector<16xf32>
    %5 = vector.shape_cast %4 : vector<16xf32> to vector<16x1xf32>
    %cst_4 = arith.constant 1.280000e+02 : f32
    %6 = vector.broadcast %cst_4 : f32 to vector<16x1xf32>
    %7 = arith.divf %5, %6 : vector<16x1xf32>
    %8 = vector.broadcast %7 : vector<16x1xf32> to vector<16x128xf32>
    %9 = arith.subf %2, %8 : vector<16x128xf32>
    %10 = arith.mulf %9, %9 : vector<16x128xf32>
    %cst_5 = arith.constant dense<0.000000e+00> : vector<16xf32>
    %11 = vector.multi_reduction <add>, %10, %cst_5 [1] : vector<16x128xf32> to vector<16xf32>
    %12 = vector.shape_cast %11 : vector<16xf32> to vector<16x1xf32>
    %cst_6 = arith.constant 1.280000e+02 : f32
    %13 = vector.broadcast %cst_6 : f32 to vector<16x1xf32>
    %14 = arith.divf %12, %13 : vector<16x1xf32>
    %15 = vector.broadcast %7 : vector<16x1xf32> to vector<16x128xf32>
    %16 = arith.subf %2, %15 : vector<16x128xf32>
    %cst_7 = arith.constant 9.99999974E-6 : f32
    %17 = vector.broadcast %cst_7 : f32 to vector<16x1xf32>
    %18 = arith.addf %14, %17 : vector<16x1xf32>
    %19 = math.rsqrt %18 : vector<16x1xf32>
    %20 = vector.broadcast %19 : vector<16x1xf32> to vector<16x128xf32>
    %21 = arith.mulf %16, %20 : vector<16x128xf32>
    %22 = vector.broadcast %3 : vector<1x128xf32> to vector<16x128xf32>
    %23 = arith.mulf %21, %22 : vector<16x128xf32>
    %24 = arith.truncf %23 : vector<16x128xf32> to vector<16x128xbf16>
    %c0_8 = arith.constant 0 : index
    %c0_9 = arith.constant 0 : index
    %25 = vector.load %arg5[%c0_8, %c0_9] : memref<128x64xbf16, #tpu.memory_space<vmem>>, vector<128x64xbf16>
    %cst_10 = arith.constant dense<0.000000e+00> : vector<16x64xf32>
    %26 = tpu.matmul %24, %25, %cst_10 {dimension_numbers = #tpu.dot_dimension_numbers<[1], [0], [0], [1], [0, 0, 1, 1], [], []>} : vector<16x128xbf16>, vector<128x64xbf16>, vector<16x64xf32> -> vector<16x64xf32>
    %27 = arith.truncf %26 : vector<16x64xf32> to vector<16x64xbf16>
    %c0_11 = arith.constant 0 : index
    %c0_12 = arith.constant 0 : index
    %28 = vector.load %arg6[%c0_11, %c0_12] : memref<128x64xbf16, #tpu.memory_space<vmem>>, vector<128x64xbf16>
    %cst_13 = arith.constant dense<0.000000e+00> : vector<16x64xf32>
    %29 = tpu.matmul %24, %28, %cst_13 {dimension_numbers = #tpu.dot_dimension_numbers<[1], [0], [0], [1], [0, 0, 1, 1], [], []>} : vector<16x128xbf16>, vector<128x64xbf16>, vector<16x64xf32> -> vector<16x64xf32>
    %30 = arith.truncf %29 : vector<16x64xf32> to vector<16x64xbf16>
    %c0_14 = arith.constant 0 : index
    %c0_15 = arith.constant 0 : index
    %c0_16 = arith.constant 0 : index
    %31 = vector.load %arg4[%c0_14, %c0_15, %c0_16] : memref<8x128x64xbf16, #tpu.memory_space<vmem>>, vector<1x128x64xbf16>
    %32 = vector.shape_cast %31 : vector<1x128x64xbf16> to vector<128x64xbf16>
    %cst_17 = arith.constant dense<0.000000e+00> : vector<16x64xf32>
    %33 = tpu.matmul %24, %32, %cst_17 {dimension_numbers = #tpu.dot_dimension_numbers<[1], [0], [0], [1], [0, 0, 1, 1], [], []>} : vector<16x128xbf16>, vector<128x64xbf16>, vector<16x64xf32> -> vector<16x64xf32>
    %c1 = arith.constant 1 : index
    %c0_18 = arith.constant 0 : index
    %c0_19 = arith.constant 0 : index
    %34 = vector.load %arg4[%c1, %c0_18, %c0_19] : memref<8x128x64xbf16, #tpu.memory_space<vmem>>, vector<1x128x64xbf16>
    %35 = vector.shape_cast %34 : vector<1x128x64xbf16> to vector<128x64xbf16>
    %cst_20 = arith.constant dense<0.000000e+00> : vector<16x64xf32>
    %36 = tpu.matmul %24, %35, %cst_20 {dimension_numbers = #tpu.dot_dimension_numbers<[1], [0], [0], [1], [0, 0, 1, 1], [], []>} : vector<16x128xbf16>, vector<128x64xbf16>, vector<16x64xf32> -> vector<16x64xf32>
    %c2 = arith.constant 2 : index
    %c0_21 = arith.constant 0 : index
    %c0_22 = arith.constant 0 : index
    %37 = vector.load %arg4[%c2, %c0_21, %c0_22] : memref<8x128x64xbf16, #tpu.memory_space<vmem>>, vector<1x128x64xbf16>
    %38 = vector.shape_cast %37 : vector<1x128x64xbf16> to vector<128x64xbf16>
    %cst_23 = arith.constant dense<0.000000e+00> : vector<16x64xf32>
    %39 = tpu.matmul %24, %38, %cst_23 {dimension_numbers = #tpu.dot_dimension_numbers<[1], [0], [0], [1], [0, 0, 1, 1], [], []>} : vector<16x128xbf16>, vector<128x64xbf16>, vector<16x64xf32> -> vector<16x64xf32>
    %c3 = arith.constant 3 : index
    %c0_24 = arith.constant 0 : index
    %c0_25 = arith.constant 0 : index
    %40 = vector.load %arg4[%c3, %c0_24, %c0_25] : memref<8x128x64xbf16, #tpu.memory_space<vmem>>, vector<1x128x64xbf16>
    %41 = vector.shape_cast %40 : vector<1x128x64xbf16> to vector<128x64xbf16>
    %cst_26 = arith.constant dense<0.000000e+00> : vector<16x64xf32>
    %42 = tpu.matmul %24, %41, %cst_26 {dimension_numbers = #tpu.dot_dimension_numbers<[1], [0], [0], [1], [0, 0, 1, 1], [], []>} : vector<16x128xbf16>, vector<128x64xbf16>, vector<16x64xf32> -> vector<16x64xf32>
    %c4 = arith.constant 4 : index
    %c0_27 = arith.constant 0 : index
    %c0_28 = arith.constant 0 : index
    %43 = vector.load %arg4[%c4, %c0_27, %c0_28] : memref<8x128x64xbf16, #tpu.memory_space<vmem>>, vector<1x128x64xbf16>
    %44 = vector.shape_cast %43 : vector<1x128x64xbf16> to vector<128x64xbf16>
    %cst_29 = arith.constant dense<0.000000e+00> : vector<16x64xf32>
    %45 = tpu.matmul %24, %44, %cst_29 {dimension_numbers = #tpu.dot_dimension_numbers<[1], [0], [0], [1], [0, 0, 1, 1], [], []>} : vector<16x128xbf16>, vector<128x64xbf16>, vector<16x64xf32> -> vector<16x64xf32>
    %c5 = arith.constant 5 : index
    %c0_30 = arith.constant 0 : index
    %c0_31 = arith.constant 0 : index
    %46 = vector.load %arg4[%c5, %c0_30, %c0_31] : memref<8x128x64xbf16, #tpu.memory_space<vmem>>, vector<1x128x64xbf16>
    %47 = vector.shape_cast %46 : vector<1x128x64xbf16> to vector<128x64xbf16>
    %cst_32 = arith.constant dense<0.000000e+00> : vector<16x64xf32>
    %48 = tpu.matmul %24, %47, %cst_32 {dimension_numbers = #tpu.dot_dimension_numbers<[1], [0], [0], [1], [0, 0, 1, 1], [], []>} : vector<16x128xbf16>, vector<128x64xbf16>, vector<16x64xf32> -> vector<16x64xf32>
    %c6 = arith.constant 6 : index
    %c0_33 = arith.constant 0 : index
    %c0_34 = arith.constant 0 : index
    %49 = vector.load %arg4[%c6, %c0_33, %c0_34] : memref<8x128x64xbf16, #tpu.memory_space<vmem>>, vector<1x128x64xbf16>
    %50 = vector.shape_cast %49 : vector<1x128x64xbf16> to vector<128x64xbf16>
    %cst_35 = arith.constant dense<0.000000e+00> : vector<16x64xf32>
    %51 = tpu.matmul %24, %50, %cst_35 {dimension_numbers = #tpu.dot_dimension_numbers<[1], [0], [0], [1], [0, 0, 1, 1], [], []>} : vector<16x128xbf16>, vector<128x64xbf16>, vector<16x64xf32> -> vector<16x64xf32>
    %c7 = arith.constant 7 : index
    %c0_36 = arith.constant 0 : index
    %c0_37 = arith.constant 0 : index
    %52 = vector.load %arg4[%c7, %c0_36, %c0_37] : memref<8x128x64xbf16, #tpu.memory_space<vmem>>, vector<1x128x64xbf16>
    %53 = vector.shape_cast %52 : vector<1x128x64xbf16> to vector<128x64xbf16>
    %cst_38 = arith.constant dense<0.000000e+00> : vector<16x64xf32>
    %54 = tpu.matmul %24, %53, %cst_38 {dimension_numbers = #tpu.dot_dimension_numbers<[1], [0], [0], [1], [0, 0, 1, 1], [], []>} : vector<16x128xbf16>, vector<128x64xbf16>, vector<16x64xf32> -> vector<16x64xf32>
    %55 = tpu.concatenate %33, %36, %39, %42, %45, %48, %51, %54 in 0 : vector<16x64xf32>, vector<16x64xf32>, vector<16x64xf32>, vector<16x64xf32>, vector<16x64xf32>, vector<16x64xf32>, vector<16x64xf32>, vector<16x64xf32> -> vector<128x64xf32>
    %cst_39 = arith.constant 1.250000e-01 : f32
    %56 = vector.broadcast %cst_39 : f32 to vector<128x64xf32>
    %57 = arith.mulf %55, %56 : vector<128x64xf32>
    %58 = arith.truncf %57 : vector<128x64xf32> to vector<128x64xbf16>
    %cst_40 = arith.constant dense<0.000000e+00> : vector<128x16xf32>
    %59 = tpu.matmul %58, %27, %cst_40 {dimension_numbers = #tpu.dot_dimension_numbers<[1], [1], [0], [0], [0, 0, 1, 0], [], []>} : vector<128x64xbf16>, vector<16x64xbf16>, vector<128x16xf32> -> vector<128x16xf32>
    %c0_41 = arith.constant 0 : index
    %c0_42 = arith.constant 0 : index
    %60 = vector.load %arg2[%c0_41, %c0_42] : memref<128x16xbf16, #tpu.memory_space<vmem>>, vector<128x16xbf16>
    %61 = arith.extf %60 : vector<128x16xbf16> to vector<128x16xf32>
    %62 = arith.addf %59, %61 : vector<128x16xf32>
    %cst_43 = arith.constant dense<0xFF800000> : vector<128xf32>
    %63 = vector.multi_reduction <maximumf>, %62, %cst_43 [1] : vector<128x16xf32> to vector<128xf32>
    %64 = vector.shape_cast %63 : vector<128xf32> to vector<128x1xf32>
    %65 = vector.broadcast %64 : vector<128x1xf32> to vector<128x16xf32>
    %66 = arith.subf %62, %65 : vector<128x16xf32>
    %67 = math.exp %66 : vector<128x16xf32>
    %cst_44 = arith.constant dense<0.000000e+00> : vector<128xf32>
    %68 = vector.multi_reduction <add>, %67, %cst_44 [1] : vector<128x16xf32> to vector<128xf32>
    %69 = vector.shape_cast %68 : vector<128xf32> to vector<128x1xf32>
    %70 = tpu.reciprocal %69 {approx = true} : vector<128x1xf32> -> vector<128x1xf32>
    %71 = vector.broadcast %70 : vector<128x1xf32> to vector<128x16xf32>
    %72 = arith.mulf %67, %71 : vector<128x16xf32>
    %73 = arith.truncf %72 : vector<128x16xf32> to vector<128x16xbf16>
    %cst_45 = arith.constant dense<0.000000e+00> : vector<128x64xf32>
    %74 = tpu.matmul %73, %30, %cst_45 {dimension_numbers = #tpu.dot_dimension_numbers<[1], [0], [0], [1], [0, 0, 1, 1], [], []>} : vector<128x16xbf16>, vector<16x64xbf16>, vector<128x64xf32> -> vector<128x64xf32>
    %75 = vector.extract_strided_slice %74 {offsets = [0, 0], sizes = [16, 64], strides = [1, 1]} : vector<128x64xf32> to vector<16x64xf32>
    %76 = arith.truncf %75 : vector<16x64xf32> to vector<16x64xbf16>
    %c0_46 = arith.constant 0 : index
    %c0_47 = arith.constant 0 : index
    %c0_48 = arith.constant 0 : index
    %77 = vector.load %arg7[%c0_46, %c0_47, %c0_48] : memref<8x64x128xbf16, #tpu.memory_space<vmem>>, vector<1x64x128xbf16>
    %78 = vector.shape_cast %77 : vector<1x64x128xbf16> to vector<64x128xbf16>
    %cst_49 = arith.constant dense<0.000000e+00> : vector<16x128xf32>
    %79 = tpu.matmul %76, %78, %cst_49 {dimension_numbers = #tpu.dot_dimension_numbers<[1], [0], [0], [1], [0, 0, 1, 1], [], []>} : vector<16x64xbf16>, vector<64x128xbf16>, vector<16x128xf32> -> vector<16x128xf32>
    %80 = vector.extract_strided_slice %74 {offsets = [16, 0], sizes = [16, 64], strides = [1, 1]} : vector<128x64xf32> to vector<16x64xf32>
    %81 = arith.truncf %80 : vector<16x64xf32> to vector<16x64xbf16>
    %c1_50 = arith.constant 1 : index
    %c0_51 = arith.constant 0 : index
    %c0_52 = arith.constant 0 : index
    %82 = vector.load %arg7[%c1_50, %c0_51, %c0_52] : memref<8x64x128xbf16, #tpu.memory_space<vmem>>, vector<1x64x128xbf16>
    %83 = vector.shape_cast %82 : vector<1x64x128xbf16> to vector<64x128xbf16>
    %cst_53 = arith.constant dense<0.000000e+00> : vector<16x128xf32>
    %84 = tpu.matmul %81, %83, %cst_53 {dimension_numbers = #tpu.dot_dimension_numbers<[1], [0], [0], [1], [0, 0, 1, 1], [], []>} : vector<16x64xbf16>, vector<64x128xbf16>, vector<16x128xf32> -> vector<16x128xf32>
    %85 = arith.addf %79, %84 : vector<16x128xf32>
    %86 = vector.extract_strided_slice %74 {offsets = [32, 0], sizes = [16, 64], strides = [1, 1]} : vector<128x64xf32> to vector<16x64xf32>
    %87 = arith.truncf %86 : vector<16x64xf32> to vector<16x64xbf16>
    %c2_54 = arith.constant 2 : index
    %c0_55 = arith.constant 0 : index
    %c0_56 = arith.constant 0 : index
    %88 = vector.load %arg7[%c2_54, %c0_55, %c0_56] : memref<8x64x128xbf16, #tpu.memory_space<vmem>>, vector<1x64x128xbf16>
    %89 = vector.shape_cast %88 : vector<1x64x128xbf16> to vector<64x128xbf16>
    %cst_57 = arith.constant dense<0.000000e+00> : vector<16x128xf32>
    %90 = tpu.matmul %87, %89, %cst_57 {dimension_numbers = #tpu.dot_dimension_numbers<[1], [0], [0], [1], [0, 0, 1, 1], [], []>} : vector<16x64xbf16>, vector<64x128xbf16>, vector<16x128xf32> -> vector<16x128xf32>
    %91 = arith.addf %85, %90 : vector<16x128xf32>
    %92 = vector.extract_strided_slice %74 {offsets = [48, 0], sizes = [16, 64], strides = [1, 1]} : vector<128x64xf32> to vector<16x64xf32>
    %93 = arith.truncf %92 : vector<16x64xf32> to vector<16x64xbf16>
    %c3_58 = arith.constant 3 : index
    %c0_59 = arith.constant 0 : index
    %c0_60 = arith.constant 0 : index
    %94 = vector.load %arg7[%c3_58, %c0_59, %c0_60] : memref<8x64x128xbf16, #tpu.memory_space<vmem>>, vector<1x64x128xbf16>
    %95 = vector.shape_cast %94 : vector<1x64x128xbf16> to vector<64x128xbf16>
    %cst_61 = arith.constant dense<0.000000e+00> : vector<16x128xf32>
    %96 = tpu.matmul %93, %95, %cst_61 {dimension_numbers = #tpu.dot_dimension_numbers<[1], [0], [0], [1], [0, 0, 1, 1], [], []>} : vector<16x64xbf16>, vector<64x128xbf16>, vector<16x128xf32> -> vector<16x128xf32>
    %97 = arith.addf %91, %96 : vector<16x128xf32>
    %98 = vector.extract_strided_slice %74 {offsets = [64, 0], sizes = [16, 64], strides = [1, 1]} : vector<128x64xf32> to vector<16x64xf32>
    %99 = arith.truncf %98 : vector<16x64xf32> to vector<16x64xbf16>
    %c4_62 = arith.constant 4 : index
    %c0_63 = arith.constant 0 : index
    %c0_64 = arith.constant 0 : index
    %100 = vector.load %arg7[%c4_62, %c0_63, %c0_64] : memref<8x64x128xbf16, #tpu.memory_space<vmem>>, vector<1x64x128xbf16>
    %101 = vector.shape_cast %100 : vector<1x64x128xbf16> to vector<64x128xbf16>
    %cst_65 = arith.constant dense<0.000000e+00> : vector<16x128xf32>
    %102 = tpu.matmul %99, %101, %cst_65 {dimension_numbers = #tpu.dot_dimension_numbers<[1], [0], [0], [1], [0, 0, 1, 1], [], []>} : vector<16x64xbf16>, vector<64x128xbf16>, vector<16x128xf32> -> vector<16x128xf32>
    %103 = arith.addf %97, %102 : vector<16x128xf32>
    %104 = vector.extract_strided_slice %74 {offsets = [80, 0], sizes = [16, 64], strides = [1, 1]} : vector<128x64xf32> to vector<16x64xf32>
    %105 = arith.truncf %104 : vector<16x64xf32> to vector<16x64xbf16>
    %c5_66 = arith.constant 5 : index
    %c0_67 = arith.constant 0 : index
    %c0_68 = arith.constant 0 : index
    %106 = vector.load %arg7[%c5_66, %c0_67, %c0_68] : memref<8x64x128xbf16, #tpu.memory_space<vmem>>, vector<1x64x128xbf16>
    %107 = vector.shape_cast %106 : vector<1x64x128xbf16> to vector<64x128xbf16>
    %cst_69 = arith.constant dense<0.000000e+00> : vector<16x128xf32>
    %108 = tpu.matmul %105, %107, %cst_69 {dimension_numbers = #tpu.dot_dimension_numbers<[1], [0], [0], [1], [0, 0, 1, 1], [], []>} : vector<16x64xbf16>, vector<64x128xbf16>, vector<16x128xf32> -> vector<16x128xf32>
    %109 = arith.addf %103, %108 : vector<16x128xf32>
    %110 = vector.extract_strided_slice %74 {offsets = [96, 0], sizes = [16, 64], strides = [1, 1]} : vector<128x64xf32> to vector<16x64xf32>
    %111 = arith.truncf %110 : vector<16x64xf32> to vector<16x64xbf16>
    %c6_70 = arith.constant 6 : index
    %c0_71 = arith.constant 0 : index
    %c0_72 = arith.constant 0 : index
    %112 = vector.load %arg7[%c6_70, %c0_71, %c0_72] : memref<8x64x128xbf16, #tpu.memory_space<vmem>>, vector<1x64x128xbf16>
    %113 = vector.shape_cast %112 : vector<1x64x128xbf16> to vector<64x128xbf16>
    %cst_73 = arith.constant dense<0.000000e+00> : vector<16x128xf32>
    %114 = tpu.matmul %111, %113, %cst_73 {dimension_numbers = #tpu.dot_dimension_numbers<[1], [0], [0], [1], [0, 0, 1, 1], [], []>} : vector<16x64xbf16>, vector<64x128xbf16>, vector<16x128xf32> -> vector<16x128xf32>
    %115 = arith.addf %109, %114 : vector<16x128xf32>
    %116 = vector.extract_strided_slice %74 {offsets = [112, 0], sizes = [16, 64], strides = [1, 1]} : vector<128x64xf32> to vector<16x64xf32>
    %117 = arith.truncf %116 : vector<16x64xf32> to vector<16x64xbf16>
    %c7_74 = arith.constant 7 : index
    %c0_75 = arith.constant 0 : index
    %c0_76 = arith.constant 0 : index
    %118 = vector.load %arg7[%c7_74, %c0_75, %c0_76] : memref<8x64x128xbf16, #tpu.memory_space<vmem>>, vector<1x64x128xbf16>
    %119 = vector.shape_cast %118 : vector<1x64x128xbf16> to vector<64x128xbf16>
    %cst_77 = arith.constant dense<0.000000e+00> : vector<16x128xf32>
    %120 = tpu.matmul %117, %119, %cst_77 {dimension_numbers = #tpu.dot_dimension_numbers<[1], [0], [0], [1], [0, 0, 1, 1], [], []>} : vector<16x64xbf16>, vector<64x128xbf16>, vector<16x128xf32> -> vector<16x128xf32>
    %121 = arith.addf %115, %120 : vector<16x128xf32>
    %122 = arith.addf %2, %121 : vector<16x128xf32>
    %c0_78 = arith.constant 0 : index
    %c0_79 = arith.constant 0 : index
    %123 = vector.load %arg8[%c0_78, %c0_79] : memref<1x128xf32, #tpu.memory_space<vmem>>, vector<1x128xf32>
    %cst_80 = arith.constant dense<0.000000e+00> : vector<16xf32>
    %124 = vector.multi_reduction <add>, %122, %cst_80 [1] : vector<16x128xf32> to vector<16xf32>
    %125 = vector.shape_cast %124 : vector<16xf32> to vector<16x1xf32>
    %cst_81 = arith.constant 1.280000e+02 : f32
    %126 = vector.broadcast %cst_81 : f32 to vector<16x1xf32>
    %127 = arith.divf %125, %126 : vector<16x1xf32>
    %128 = vector.broadcast %127 : vector<16x1xf32> to vector<16x128xf32>
    %129 = arith.subf %122, %128 : vector<16x128xf32>
    %130 = arith.mulf %129, %129 : vector<16x128xf32>
    %cst_82 = arith.constant dense<0.000000e+00> : vector<16xf32>
    %131 = vector.multi_reduction <add>, %130, %cst_82 [1] : vector<16x128xf32> to vector<16xf32>
    %132 = vector.shape_cast %131 : vector<16xf32> to vector<16x1xf32>
    %cst_83 = arith.constant 1.280000e+02 : f32
    %133 = vector.broadcast %cst_83 : f32 to vector<16x1xf32>
    %134 = arith.divf %132, %133 : vector<16x1xf32>
    %135 = vector.broadcast %127 : vector<16x1xf32> to vector<16x128xf32>
    %136 = arith.subf %122, %135 : vector<16x128xf32>
    %cst_84 = arith.constant 9.99999974E-6 : f32
    %137 = vector.broadcast %cst_84 : f32 to vector<16x1xf32>
    %138 = arith.addf %134, %137 : vector<16x1xf32>
    %139 = math.rsqrt %138 : vector<16x1xf32>
    %140 = vector.broadcast %139 : vector<16x1xf32> to vector<16x128xf32>
    %141 = arith.mulf %136, %140 : vector<16x128xf32>
    %142 = vector.broadcast %123 : vector<1x128xf32> to vector<16x128xf32>
    %143 = arith.mulf %141, %142 : vector<16x128xf32>
    %144 = arith.truncf %143 : vector<16x128xf32> to vector<16x128xbf16>
    %c0_85 = arith.constant 0 : index
    %c0_86 = arith.constant 0 : index
    %145 = vector.load %arg9[%c0_85, %c0_86] : memref<128x256xbf16, #tpu.memory_space<vmem>>, vector<128x256xbf16>
    %cst_87 = arith.constant dense<0.000000e+00> : vector<16x256xf32>
    %146 = tpu.matmul %144, %145, %cst_87 {dimension_numbers = #tpu.dot_dimension_numbers<[1], [0], [0], [1], [0, 0, 1, 1], [], []>} : vector<16x128xbf16>, vector<128x256xbf16>, vector<16x256xf32> -> vector<16x256xf32>
    %c0_88 = arith.constant 0 : index
    %c0_89 = arith.constant 0 : index
    %147 = vector.load %arg10[%c0_88, %c0_89] : memref<128x256xbf16, #tpu.memory_space<vmem>>, vector<128x256xbf16>
    %cst_90 = arith.constant dense<0.000000e+00> : vector<16x256xf32>
    %148 = tpu.matmul %144, %147, %cst_90 {dimension_numbers = #tpu.dot_dimension_numbers<[1], [0], [0], [1], [0, 0, 1, 1], [], []>} : vector<16x128xbf16>, vector<128x256xbf16>, vector<16x256xf32> -> vector<16x256xf32>
    %149 = arith.mulf %148, %148 : vector<16x256xf32>
    %150 = arith.mulf %148, %149 : vector<16x256xf32>
    %cst_91 = arith.constant 4.471500e-02 : f32
    %151 = vector.broadcast %cst_91 : f32 to vector<16x256xf32>
    %152 = arith.mulf %151, %150 : vector<16x256xf32>
    %153 = arith.addf %148, %152 : vector<16x256xf32>
    %cst_92 = arith.constant 0.797884583 : f32
    %154 = vector.broadcast %cst_92 : f32 to vector<16x256xf32>
    %155 = arith.mulf %154, %153 : vector<16x256xf32>
    %156 = math.tanh %155 : vector<16x256xf32>
    %cst_93 = arith.constant 1.000000e+00 : f32
    %157 = vector.broadcast %cst_93 : f32 to vector<16x256xf32>
    %158 = arith.addf %157, %156 : vector<16x256xf32>
    %cst_94 = arith.constant 5.000000e-01 : f32
    %159 = vector.broadcast %cst_94 : f32 to vector<16x256xf32>
    %160 = arith.mulf %159, %158 : vector<16x256xf32>
    %161 = arith.mulf %148, %160 : vector<16x256xf32>
    %162 = arith.mulf %146, %161 : vector<16x256xf32>
    %163 = arith.truncf %162 : vector<16x256xf32> to vector<16x256xbf16>
    %c0_95 = arith.constant 0 : index
    %c0_96 = arith.constant 0 : index
    %164 = vector.load %arg11[%c0_95, %c0_96] : memref<256x128xbf16, #tpu.memory_space<vmem>>, vector<256x128xbf16>
    %cst_97 = arith.constant dense<0.000000e+00> : vector<16x128xf32>
    %165 = tpu.matmul %163, %164, %cst_97 {dimension_numbers = #tpu.dot_dimension_numbers<[1], [0], [0], [1], [0, 0, 1, 1], [], []>} : vector<16x256xbf16>, vector<256x128xbf16>, vector<16x128xf32> -> vector<16x128xf32>
    %166 = arith.addf %122, %165 : vector<16x128xf32>
    %167 = arith.truncf %166 : vector<16x128xf32> to vector<16x128xbf16>
    %c0_98 = arith.constant 0 : index
    %c0_99 = arith.constant 0 : index
    %c0_100 = arith.constant 0 : index
    %168 = vector.load %arg12[%c0_98, %c0_99, %c0_100] : memref<1x16x128xbf16, #tpu.memory_space<vmem>>, vector<1x16x128xbf16>
    %169 = vector.shape_cast %168 : vector<1x16x128xbf16> to vector<16x128xbf16>
    %170 = vector.shape_cast %167 : vector<16x128xbf16> to vector<1x16x128xbf16>
    tpu.vector_store %arg12[%c0_98, %c0_99, %c0_100], %170 {strides = array<i32>} : memref<1x16x128xbf16, #tpu.memory_space<vmem>>, vector<1x16x128xbf16>,
    return
  }
  func.func @transform_0(%arg0: i32) -> (i32, i32, i32) {
    %c0_i32 = arith.constant 0 : i32
    %c0_i32_0 = arith.constant 0 : i32
    %c0_i32_1 = arith.constant 0 : i32
    return %arg0, %c0_i32, %c0_i32_0 : i32, i32, i32
  }
  func.func @transform_1(%arg0: i32) -> (i32, i32) {
    %c0_i32 = arith.constant 0 : i32
    %c0_i32_0 = arith.constant 0 : i32
    %c0_i32_1 = arith.constant 0 : i32
    return %c0_i32, %c0_i32_0 : i32, i32
  }
  func.func @transform_2(%arg0: i32) -> (i32, i32) {
    %c0_i32 = arith.constant 0 : i32
    %c0_i32_0 = arith.constant 0 : i32
    %c0_i32_1 = arith.constant 0 : i32
    return %c0_i32, %c0_i32_0 : i32, i32
  }
  func.func @transform_3(%arg0: i32) -> (i32, i32, i32) {
    %c0_i32 = arith.constant 0 : i32
    %c0_i32_0 = arith.constant 0 : i32
    %c0_i32_1 = arith.constant 0 : i32
    %c0_i32_2 = arith.constant 0 : i32
    return %c0_i32, %c0_i32_0, %c0_i32_1 : i32, i32, i32
  }
  func.func @transform_4(%arg0: i32) -> (i32, i32) {
    %c0_i32 = arith.constant 0 : i32
    %c0_i32_0 = arith.constant 0 : i32
    %c0_i32_1 = arith.constant 0 : i32
    return %c0_i32, %c0_i32_0 : i32, i32
  }
  func.func @transform_5(%arg0: i32) -> (i32, i32) {
    %c0_i32 = arith.constant 0 : i32
    %c0_i32_0 = arith.constant 0 : i32
    %c0_i32_1 = arith.constant 0 : i32
    return %c0_i32, %c0_i32_0 : i32, i32
  }
  func.func @transform_6(%arg0: i32) -> (i32, i32, i32) {
    %c0_i32 = arith.constant 0 : i32
    %c0_i32_0 = arith.constant 0 : i32
    %c0_i32_1 = arith.constant 0 : i32
    %c0_i32_2 = arith.constant 0 : i32
    return %c0_i32, %c0_i32_0, %c0_i32_1 : i32, i32, i32
  }
  func.func @transform_7(%arg0: i32) -> (i32, i32) {
    %c0_i32 = arith.constant 0 : i32
    %c0_i32_0 = arith.constant 0 : i32
    %c0_i32_1 = arith.constant 0 : i32
    return %c0_i32, %c0_i32_0 : i32, i32
  }
  func.func @transform_8(%arg0: i32) -> (i32, i32) {
    %c0_i32 = arith.constant 0 : i32
    %c0_i32_0 = arith.constant 0 : i32
    %c0_i32_1 = arith.constant 0 : i32
    return %c0_i32, %c0_i32_0 : i32, i32
  }
  func.func @transform_9(%arg0: i32) -> (i32, i32) {
    %c0_i32 = arith.constant 0 : i32
    %c0_i32_0 = arith.constant 0 : i32
    %c0_i32_1 = arith.constant 0 : i32
    return %c0_i32, %c0_i32_0 : i32, i32
  }
  func.func @transform_10(%arg0: i32) -> (i32, i32) {
    %c0_i32 = arith.constant 0 : i32
    %c0_i32_0 = arith.constant 0 : i32
    %c0_i32_1 = arith.constant 0 : i32
    return %c0_i32, %c0_i32_0 : i32, i32
  }
  func.func @transform_11(%arg0: i32) -> (i32, i32, i32) {
    %c0_i32 = arith.constant 0 : i32
    %c0_i32_0 = arith.constant 0 : i32
    %c0_i32_1 = arith.constant 0 : i32
    return %arg0, %c0_i32, %c0_i32_0 : i32, i32, i32
  }
}

</mosaic_0001>

<bundles_post_ra>
// kernel: tpu_custom_call.1
= control target key start
LH: loop header
LB: loop body
LE: loop exit
PB: predicated region body
PF: predicated region fallthrough
CT: control target
= control target key end

     0   :  { %s5551_s0 = inlined_call_operand.vmem [shape: bf16[2,16,128], index: 0, kind: input, shape index: {}]   ;;  %s5552_s1 = inlined_call_operand.vmem [shape: bf16[128,16], index: 1, kind: input, shape index: {}]   ;;  %s5553_s2 = inlined_call_operand.vmem [shape: f32[1,128], index: 2, kind: input, shape index: {}]   ;;  %s5554_s3 = inlined_call_operand.vmem [shape: bf16[8,128,64], index: 3, kind: input, shape index: {}]   ;;  %s5555_s4 = inlined_call_operand.vmem [shape: bf16[128,64], index: 4, kind: input, shape index: {}]   ;;  %s5556_s5 = inlined_call_operand.vmem [shape: bf16[128,64], index: 5, kind: input, shape index: {}]   ;;  %s5557_s6 = inlined_call_operand.vmem [shape: bf16[8,64,128], index: 6, kind: input, shape index: {}]   ;;  %s5558_s7 = inlined_call_operand.vmem [shape: f32[1,128], index: 7, kind: input, shape index: {}]   ;;  %s5559_s8 = inlined_call_operand.vmem [shape: bf16[128,256], index: 8, kind: input, shape index: {}]   ;;  %s5560_s9 = inlined_call_operand.vmem [shape: bf16[128,256], index: 9, kind: input, shape index: {}]   ;;  %s5561_s10 = inlined_call_operand.vmem [shape: bf16[256,128], index: 10, kind: input, shape index: {}]   ;;  %s5562_s11 = inlined_call_operand.hbm [shape: bf16[2,16,128], index: 11, kind: output, shape index: {}]  }
   0x1   :  { %5563 = sst [smem:[#allocation5_spill]] %s5551_s0 }
   0x2   :  { %16 = vsyncpa [#allocation3], 0 }
   0x3   :  { %18 = vsyncpa [#allocation3 + $0x1], 0  ;;  %s4571_s17 = smov 0   ;;  %s4573_s18 = smov 0  }
   0x4   :  { %s4575_s19 = smov 0   ;;  %s4577_s20 = smov 0  }
   0x5 LB: > { %s4592_s21 = sadd.s32 4294967295, %s4503_s20   ;;  %s3215_s22 = sadd.s32 4294967294, %s4503_s20   ;;  %s4503_s20 = sphi %s4577_s20, %s5570_s20   ;;  %s4499_s19 = sphi %s4575_s19, %s5569_s19   ;;  %s4495_s18 = sphi %s4573_s18, %s5568_s18   ;;  %s4491_s17 = sphi %s4571_s17, %s5567_s17  }
   0x6   : > { %s4596_s23 = sadd.s32 1, %s4503_s20   ;;  %s267_s24 = sadd.s32 1, %s4499_s19 }
   0x7   : > { %s264_s25 = ssub.s32 %s4503_s20, %s4596_s23  ;;  %p277_p0 = scmp.ne.s32.totalorder %s4499_s19, %s4495_s18 }
   0x8   : > { %p265_p1 = scmp.eq.s32.totalorder %s264_s25, 0  ;;  %p278_p2 = scmp.eq.s32.totalorder %s4592_s21, 1 }
   0x9   : > { %p283_p3 = scmp.ne.s32.totalorder %s4495_s18, %s4491_s17  ;;  %p284_p4 = scmp.eq.s32.totalorder %s3215_s22, 1 }
   0xa   : > { %s4607_s26 = scalar_select %p265_p1, %s4499_s19, %s267_s24  }
   0xb   : > { %p4609_p5 = por %p278_p2, %p277_p0  ;;  %p4613_p6 = por %p284_p4, %p283_p3 }
   0xc   : > { %p3218_p7 = scmp.ge.s32.totalorder %s4503_s20, 1  ;;  %p340_p8 = scmp.lt.s32.totalorder %s4503_s20, 3 }
   0xe   : > { %p341_p9 = pnand %p3218_p7, %p340_p8 }
   0xf   : > { %p380_p10 = scmp.lt.s32.totalorder (!%p341_p9), %s4592_s21, 1  ;;  %s5566_s0 = sld [smem:[#allocation5_spill]] (!%p341_p9)  ;;  %v4185_v3 = vld [vmem:[%s5555_s4] sm:$0xff] (!%p341_p9)   ;;  %v4505_v5 = vmov (!%p341_p9), 0.0   ;;  %v4187_v6 = vld [vmem:[%s5555_s4 + $0x8] sm:$0xff] (!%p341_p9)   ;;  %v4189_v16 = vld [vmem:[%s5555_s4 + $0x10] sm:$0xff] (!%p341_p9)  }
  0x10   : > { %344 = sbr.rel (%p341_p9) target bundleno = 2460 (0x99c), region = 64  ;;  %v4186_v4 = vld [vmem:[%s5556_s5] sm:$0xff] (!%p341_p9)   ;;  %3805 = vmatprep.subr.bf16.mxu0 (!%p341_p9), %v4505_v5  ;;  %3825 = vmatprep.subr.bf16.mxu1 (!%p341_p9), %v4505_v5  ;;  %v4188_v7 = vld [vmem:[%s5556_s5 + $0x8] sm:$0xff] (!%p341_p9)   ;;  %v4190_v17 = vld [vmem:[%s5556_s5 + $0x10] sm:$0xff] (!%p341_p9)   ;;  %vm4506_vm0 = vmmov (!%p341_p9), 0   ;;  %vm1538_vm1 = vcmask (!%p341_p9), 523264  }
  0x11   : > { %3806 = vmatpush3.bf16.msra.mxu0 (!%p341_p9), %v4185_v3  ;;  %3826 = vmatpush3.bf16.msra.mxu1 (!%p341_p9), %v4186_v4  ;;  %v4191_v18 = vld [vmem:[%s5555_s4 + $0x18] sm:$0xff] (!%p341_p9)   ;;  %v4193_v20 = vld [vmem:[%s5555_s4 + $0x20] sm:$0xff] (!%p341_p9)   ;;  %v4195_v22 = vld [vmem:[%s5555_s4 + $0x28] sm:$0xff] (!%p341_p9)   ;;  %vm1663_vm2 = vcmask (!%p341_p9), 130048   ;;  %s377_s16 = sand.u32 (!%p341_p9), 1, %s4495_s18  }
  0x12   : > { %3807 = vmatprep.subr.bf16.mxu0 (!%p341_p9), %v4505_v5  ;;  %3827 = vmatprep.subr.bf16.mxu1 (!%p341_p9), %v4505_v5  ;;  %v4192_v19 = vld [vmem:[%s5556_s5 + $0x18] sm:$0xff] (!%p341_p9)   ;;  %v4194_v21 = vld [vmem:[%s5556_s5 + $0x20] sm:$0xff] (!%p341_p9)   ;;  %v4196_v23 = vld [vmem:[%s5556_s5 + $0x28] sm:$0xff] (!%p341_p9)   ;;  %s3219_s22 = sshll.u32 (!%p341_p9), %s377_s16, 3 }
  0x13   : > { %v4197_v24 = vld [vmem:[%s5555_s4 + $0x30] sm:$0xff] (!%p341_p9)   ;;  %v4199_v26 = vld [vmem:[%s5555_s4 + $0x38] sm:$0xff] (!%p341_p9)   ;;  %3821 = vmatprep.mubr.msk.bf16.mxu0 (!%p341_p9), %vm4506_vm0, %v4505_v5  ;;  %3841 = vmatprep.mubr.msk.bf16.mxu1 (!%p341_p9), %vm4506_vm0, %v4505_v5  ;;  %v3222_v37 = vld [vmem:[%s5553_s2] ss:$0 sm:$0xff] (!%p341_p9)  ;;  %s379_s24 = scalar_lea.vmem (!%p341_p9), [#allocation2], %s3219_s22 }
  0x14   : > { %v4198_v25 = vld [vmem:[%s5556_s5 + $0x30] sm:$0xff] (!%p341_p9)   ;;  %v4200_v27 = vld [vmem:[%s5556_s5 + $0x38] sm:$0xff] (!%p341_p9)   ;;  %v4201_v41 = vld [vmem:[%s5554_s3] sm:$0xff] (!%p341_p9)   ;;  %s3153_s25 = sshll.u32 (!%p341_p9), %s379_s24, 4  ;;  %s5508_s25 = int_to_ptr.vmem [resolvable:$true] %s3153_s25 }
  0x15   : > { %3808 = vmatpush3.bf16.msra.mxu0 (!%p341_p9), %v4187_v6  ;;  %3828 = vmatpush3.bf16.msra.mxu1 (!%p341_p9), %v4188_v7  ;;  %v4202_v42 = vld [vmem:[%s5554_s3 + $0x40] sm:$0xff] (!%p341_p9)   ;;  %v4203_v44 = vld [vmem:[%s5554_s3 + $0x8] sm:$0xff] (!%p341_p9)   ;;  %v4205_v46 = vld [vmem:[%s5554_s3 + $0x10] sm:$0xff] (!%p341_p9)  }
  0x16   : > { %3809 = vmatprep.subr.bf16.mxu0 (!%p341_p9), %v4505_v5  ;;  %3829 = vmatprep.subr.bf16.mxu1 (!%p341_p9), %v4505_v5  ;;  %v4204_v45 = vld [vmem:[%s5554_s3 + $0x48] sm:$0xff] (!%p341_p9)   ;;  %v4206_v47 = vld [vmem:[%s5554_s3 + $0x50] sm:$0xff] (!%p341_p9)   ;;  %v4207_v48 = vld [vmem:[%s5554_s3 + $0x18] sm:$0xff] (!%p341_p9)  }
  0x17   : > { %s381_s29 = scalar_select %p380_p10, %s4592_s21, 1  ;;  %v4208_v49 = vld [vmem:[%s5554_s3 + $0x58] sm:$0xff]   ;;  %v4209_v50 = vld [vmem:[%s5554_s3 + $0x20] sm:$0xff]   ;;  %v4211_v52 = vld [vmem:[%s5554_s3 + $0x28] sm:$0xff]  }
  0x18   : > { %v4210_v51 = vld [vmem:[%s5554_s3 + $0x60] sm:$0xff]   ;;  %v4212_v53 = vld [vmem:[%s5554_s3 + $0x68] sm:$0xff]   ;;  %v4213_v54 = vld [vmem:[%s5554_s3 + $0x30] sm:$0xff]  }
  0x19   : > { %s3583_s30 = sshll.u32 %s381_s29, 3  ;;  %3810 = vmatpush3.bf16.msra.mxu0 %v4189_v16  ;;  %3830 = vmatpush3.bf16.msra.mxu1 %v4190_v17  ;;  %v4214_v55 = vld [vmem:[%s5554_s3 + $0x70] sm:$0xff]   ;;  %v4215_v56 = vld [vmem:[%s5554_s3 + $0x38] sm:$0xff]   ;;  %v4217_v58 = vld [vmem:[%s5554_s3 + $0x80] sm:$0xff]   ;;  %s3586_s29 = sshll.u32 %s4592_s21, 7 }
  0x1a   : > { %s384_s14 = scalar_lea.vmem %s5566_s0, %s3583_s30  ;;  %3811 = vmatprep.subr.bf16.mxu0 %v4505_v5  ;;  %3831 = vmatprep.subr.bf16.mxu1 %v4505_v5  ;;  %v4216_v57 = vld [vmem:[%s5554_s3 + $0x78] sm:$0xff]   ;;  %v4218_v59 = vld [vmem:[%s5554_s3 + $0xc0] sm:$0xff]   ;;  %v4219_v60 = vld [vmem:[%s5554_s3 + $0x88] sm:$0xff]   ;;  %s5506_s13 = scalar_lea.hbm %s5562_s11, %s3586_s29 }
  0x1b   : > { %v3588_v0 = vld [vmem:[%s384_s14] sm:$0xff]   ;;  %v4220_v61 = vld [vmem:[%s5554_s3 + $0xc8] sm:$0xff]   ;;  %v4221_v62 = vld [vmem:[%s5554_s3 + $0x90] sm:$0xff]   ;;  %s5510_s14 = scalar_lea.sflag [#allocation3], %s377_s16  ;;  %s4441_s0 = scalar_lea.vmem %s5508_s25, 128 }
  0x1c   : > { %v4624_v1 = vunpack.c.l.bf16 %v3588_v0  ;;  %v4627_v2 = vunpack.c.h.bf16 %v3588_v0  ;;  %v4222_v63 = vld [vmem:[%s5554_s3 + $0xd0] sm:$0xff]   ;;  %v4223_v0 = vld [vmem:[%s5554_s3 + $0x98] sm:$0xff]   ;;  %v4225_v4 = vld [vmem:[%s5554_s3 + $0xa0] sm:$0xff]   ;;  %p4442_p11 = scmp.ne.s32.totalorder %s5508_s25, %s4441_s0  ;;  %s4508_s21 = smov [#allocation2]  }
  0x1d   : > { %3812 = vmatpush3.bf16.msra.mxu0 %v4191_v18  ;;  %3832 = vmatpush3.bf16.msra.mxu1 %v4192_v19  ;;  %v4224_v3 = vld [vmem:[%s5554_s3 + $0xd8] sm:$0xff]   ;;  %v4226_v6 = vld [vmem:[%s5554_s3 + $0xe0] sm:$0xff]   ;;  %v4227_v7 = vld [vmem:[%s5554_s3 + $0xa8] sm:$0xff]   ;;  %s4445_s15 = sshll.u32 %s4508_s21, 4  ;;  %s4446_s15 = int_to_ptr.vmem [resolvable:$false] %s4445_s15 }
  0x1e   : > { %391 = vadd.xlane.f32.xlu0 %v4624_v1  ;;  %3813 = vmatprep.subr.bf16.mxu0 %v4505_v5  ;;  %v4236_v16 = vld [vmem:[%s5554_s3 + $0x148] sm:$0xff]   ;;  %v4237_v17 = vld [vmem:[%s5554_s3 + $0x110] sm:$0xff]   ;;  %v4239_v19 = vld [vmem:[%s5554_s3 + $0x118] sm:$0xff]   ;;  %p4443_p12 = pnand %p4442_p11, %p4609_p5  ;;  %s4447_s22 = scalar_lea.vmem %s4446_s15, 256 }
  0x1f   : > { %3833 = vmatprep.subr.bf16.mxu1 %v4505_v5  ;;  %v4238_v18 = vld [vmem:[%s5554_s3 + $0x150] sm:$0xff]   ;;  %p4448_p0 = scmp.lt.s32.totalorder %s5508_s25, %s4446_s15  ;;  %p4449_p1 = scmp.lt.s32.totalorder %s4447_s22, %s4441_s0 }
  0x20   : > { %p4444_p13 = pneg %p4443_p12 }
  0x21   : > { %3814 = vmatpush3.bf16.msra.mxu0 %v4193_v20  ;;  %3834 = vmatpush3.bf16.msra.mxu1 %v4194_v21  ;;  %v4240_v20 = vld [vmem:[%s5554_s3 + $0x158] sm:$0xff]   ;;  %v4241_v21 = vld [vmem:[%s5554_s3 + $0x120] sm:$0xff]   ;;  %p4450_p2 = por %p4449_p1, %p4448_p0 }
  0x22   : > { %393 = vadd.xlane.f32.xlu0 %v4627_v2  ;;  %3815 = vmatprep.subr.bf16.mxu0 %v4505_v5 }
  0x23   : > { %3835 = vmatprep.subr.bf16.mxu1 %v4505_v5  ;;  %p4451_p3 = pnand %p4450_p2, %p4444_p13 }
  0x25   : > { %3816 = vmatpush3.bf16.msra.mxu0 %v4195_v22  ;;  %3836 = vmatpush3.bf16.msra.mxu1 %v4196_v23  ;;  %v4242_v22 = vld [vmem:[%s5554_s3 + $0x160] sm:$0xff]   ;;  %v4243_v23 = vld [vmem:[%s5554_s3 + $0x128] sm:$0xff]  }
  0x26   : > { %3817 = vmatprep.subr.bf16.mxu0 %v4505_v5  ;;  %3837 = vmatprep.subr.bf16.mxu1 %v4505_v5 }
  0x29   : > { %3818 = vmatpush3.bf16.msra.mxu0 %v4197_v24  ;;  %3838 = vmatpush3.bf16.msra.mxu1 %v4198_v25  ;;  %v4244_v24 = vld [vmem:[%s5554_s3 + $0x168] sm:$0xff]   ;;  %v4245_v25 = vld [vmem:[%s5554_s3 + $0x130] sm:$0xff]  }
  0x2a   : > { %3819 = vmatprep.subr.bf16.mxu0 %v4505_v5  ;;  %3839 = vmatprep.subr.bf16.mxu1 %v4505_v5 }
  0x2d   : > { %3820 = vmatpush3.bf16.msra.mxu0 %v4199_v26  ;;  %3840 = vmatpush3.bf16.msra.mxu1 %v4200_v27  ;;  %v4246_v26 = vld [vmem:[%s5554_s3 + $0x170] sm:$0xff]   ;;  %v4247_v27 = vld [vmem:[%s5554_s3 + $0x138] sm:$0xff]  }
  0x2e   : > { %3845 = vmatprep.subr.bf16.mxu0 %v4505_v5  ;;  %3865 = vmatprep.subr.bf16.mxu1 %v4505_v5 }
  0xab   : > { %v392_v8 = vpop.xlane.xlu0 %391 }
  0xac   : > { %v396_v9 = vmul.f32 0.0078125, %v392_v8  ;;  %v4228_v8 = vld [vmem:[%s5554_s3 + $0xe8] sm:$0xff]  }
  0xae   : > { %v398_v10 = vsub.f32 %v4624_v1, %v396_v9  ;;  %v4229_v9 = vld [vmem:[%s5554_s3 + $0xb0] sm:$0xff]  }
  0xaf   : > { %v394_v11 = vpop.xlane.xlu0 %393 }
  0xb0   : > { %v397_v12 = vmul.f32 0.0078125, %v394_v11  ;;  %v400_v13 = vmul.f32 %v398_v10, %v398_v10  ;;  %v4231_v11 = vld [vmem:[%s5554_s3 + $0xb8] sm:$0xff]  }
  0xb2   : > { %v399_v14 = vsub.f32 %v4627_v2, %v397_v12  ;;  %402 = vadd.xlane.f32.xlu1 %v400_v13  ;;  %v4232_v12 = vld [vmem:[%s5554_s3 + $0xf8] sm:$0xff]   ;;  %v4233_v13 = vld [vmem:[%s5554_s3 + $0x100] sm:$0xff]  }
  0xb4   : > { %v401_v15 = vmul.f32 %v399_v14, %v399_v14 }
  0xb6   : > { %404 = vadd.xlane.f32.xlu1 %v401_v15  ;;  %v4235_v15 = vld [vmem:[%s5554_s3 + $0x108] sm:$0xff]  }
 0x13f   : > { %v403_v28 = vpop.xlane.xlu1 %402 }
 0x140   : > { %v406_v29 = vmul.f32 0.0078125, %v403_v28  ;;  %v4248_v28 = vld [vmem:[%s5554_s3 + $0x178] sm:$0xff]  }
 0x142   : > { %v408_v30 = vadd.f32 1e-05, %v406_v29  ;;  %v4249_v29 = vld [vmem:[%s5554_s3 + $0x180] sm:$0xff]  }
 0x143   : > { %v405_v31 = vpop.xlane.xlu1 %404 }
 0x144   : > { %4361 = vrsqrt.f32 %v408_v30  ;;  %v407_v32 = vmul.f32 0.0078125, %v405_v31  ;;  %v4250_v30 = vld [vmem:[%s5554_s3 + $0x1c0] sm:$0xff]   ;;  %v4251_v31 = vld [vmem:[%s5554_s3 + $0x188] sm:$0xff]  }
 0x146   : > { %v409_v33 = vadd.f32 1e-05, %v407_v32  ;;  %v4252_v32 = vld [vmem:[%s5554_s3 + $0x1c8] sm:$0xff]  }
 0x148   : > { %4363 = vrsqrt.f32 %v409_v33  ;;  %v4253_v33 = vld [vmem:[%s5554_s3 + $0x190] sm:$0xff]  }
 0x14e   : > { %v4362_v34 = vpop.eup %4361 }
 0x14f   : > { %v412_v35 = vmul.f32 %v4362_v34, %v398_v10  ;;  %v4230_v10 = vld [vmem:[%s5554_s3 + $0xf0] sm:$0xff]  }
 0x150   : > { %v4254_v34 = vld [vmem:[%s5554_s3 + $0x1d0] sm:$0xff]  }
 0x151   : > { %v420_v39 = vmul.f32 %v3222_v37, %v412_v35  ;;  %v4255_v35 = vld [vmem:[%s5554_s3 + $0x198] sm:$0xff]  }
 0x152   : > { %v4364_v36 = vpop.eup %4363 }
 0x153   : > { %v413_v38 = vmul.f32 %v4364_v36, %v399_v14  ;;  %v4234_v14 = vld [vmem:[%s5554_s3 + $0x140] sm:$0xff]   ;;  %v4256_v36 = vld [vmem:[%s5554_s3 + $0x1d8] sm:$0xff]  }
 0x155   : > { %v421_v40 = vmul.f32 %v3222_v37, %v413_v38  ;;  %v4257_v37 = vld [vmem:[%s5554_s3 + $0x1a0] sm:$0xff]  }
 0x156   : > { %v4258_v38 = vld [vmem:[%s5554_s3 + $0x1e0] sm:$0xff]  }
 0x157   : > { %v4711_v43 = vpack.c.bf16 %v421_v40, %v420_v39  ;;  %v4259_v39 = vld [vmem:[%s5554_s3 + $0x1a8] sm:$0xff]  }
 0x158   : > { %v4260_v40 = vld [vmem:[%s5554_s3 + $0x1e8] sm:$0xff]  }
 0x159   : > { %3822 = vmatmul.mubr.bf16.vlgmr.msra.gmra.mrb[0].mxu0 %v4711_v43  ;;  %3842 = vmatmul.mubr.bf16.vlgmr.msra.gmra.mrb[0].mxu1 %v4711_v43 }
 0x15a   : > { %3846 = vmatpush3.bf16.msra.mxu0 %v4201_v41  ;;  %3866 = vmatpush3.bf16.msra.mxu1 %v4202_v42  ;;  %v4261_v41 = vld [vmem:[%s5554_s3 + $0x1b0] sm:$0xff]  }
 0x15b   : > { %3847 = vmatprep.subr.bf16.mxu0 %v4505_v5  ;;  %3867 = vmatprep.subr.bf16.mxu1 %v4505_v5  ;;  %v4262_v42 = vld [vmem:[%s5554_s3 + $0x1f0] sm:$0xff]  }
 0x15c   : > { %3861 = vmatprep.mubr.msk.bf16.mxu0 %vm4506_vm0, %v4505_v5  ;;  %3881 = vmatprep.mubr.msk.bf16.mxu1 %vm4506_vm0, %v4505_v5 }
 0x15e   : > { %3848 = vmatpush3.bf16.msra.mxu0 %v4203_v44  ;;  %3868 = vmatpush3.bf16.msra.mxu1 %v4204_v45  ;;  %v4263_v44 = vld [vmem:[%s5554_s3 + $0x1b8] sm:$0xff]  }
 0x15f   : > { %3849 = vmatprep.subr.bf16.mxu0 %v4505_v5  ;;  %3869 = vmatprep.subr.bf16.mxu1 %v4505_v5  ;;  %v4264_v45 = vld [vmem:[%s5554_s3 + $0x1f8] sm:$0xff]  }
 0x162   : > { %3850 = vmatpush3.bf16.msra.mxu0 %v4205_v46  ;;  %3870 = vmatpush3.bf16.msra.mxu1 %v4206_v47 }
 0x163   : > { %3851 = vmatprep.subr.bf16.mxu0 %v4505_v5  ;;  %3871 = vmatprep.subr.bf16.mxu1 %v4505_v5 }
 0x166   : > { %3852 = vmatpush3.bf16.msra.mxu0 %v4207_v48  ;;  %3872 = vmatpush3.bf16.msra.mxu1 %v4208_v49 }
 0x167   : > { %3853 = vmatprep.subr.bf16.mxu0 %v4505_v5  ;;  %3873 = vmatprep.subr.bf16.mxu1 %v4505_v5 }
 0x16a   : > { %3854 = vmatpush3.bf16.msra.mxu0 %v4209_v50  ;;  %3874 = vmatpush3.bf16.msra.mxu1 %v4210_v51 }
 0x16b   : > { %3855 = vmatprep.subr.bf16.mxu0 %v4505_v5  ;;  %3875 = vmatprep.subr.bf16.mxu1 %v4505_v5 }
 0x16e   : > { %3856 = vmatpush3.bf16.msra.mxu0 %v4211_v52  ;;  %3876 = vmatpush3.bf16.msra.mxu1 %v4212_v53 }
 0x16f   : > { %3857 = vmatprep.subr.bf16.mxu0 %v4505_v5  ;;  %3877 = vmatprep.subr.bf16.mxu1 %v4505_v5 }
 0x172   : > { %3858 = vmatpush3.bf16.msra.mxu0 %v4213_v54  ;;  %3878 = vmatpush3.bf16.msra.mxu1 %v4214_v55 }
 0x173   : > { %3859 = vmatprep.subr.bf16.mxu0 %v4505_v5  ;;  %3879 = vmatprep.subr.bf16.mxu1 %v4505_v5 }
 0x176   : > { %3860 = vmatpush3.bf16.msra.mxu0 %v4215_v56  ;;  %3880 = vmatpush3.bf16.msra.mxu1 %v4216_v57 }
 0x177   : > { %3885 = vmatprep.subr.bf16.mxu0 %v4505_v5  ;;  %3905 = vmatprep.subr.bf16.mxu1 %v4505_v5 }
 0x179   : > { %3862 = vmatmul.mubr.bf16.vlgmr.msra.gmra.mrb[4].mxu0 %v4711_v43  ;;  %3882 = vmatmul.mubr.bf16.vlgmr.msra.gmra.mrb[4].mxu1 %v4711_v43 }
 0x17a   : > { %3886 = vmatpush3.bf16.msra.mxu0 %v4217_v58  ;;  %3906 = vmatpush3.bf16.msra.mxu1 %v4218_v59 }
 0x17b   : > { %3887 = vmatprep.subr.bf16.mxu0 %v4505_v5  ;;  %3907 = vmatprep.subr.bf16.mxu1 %v4505_v5 }
 0x17c   : > { %3901 = vmatprep.mubr.msk.bf16.mxu0 %vm4506_vm0, %v4505_v5  ;;  %3921 = vmatprep.mubr.msk.bf16.mxu1 %vm4506_vm0, %v4505_v5 }
 0x17e   : > { %3888 = vmatpush3.bf16.msra.mxu0 %v4219_v60  ;;  %3908 = vmatpush3.bf16.msra.mxu1 %v4220_v61 }
 0x17f   : > { %3889 = vmatprep.subr.bf16.mxu0 %v4505_v5  ;;  %3909 = vmatprep.subr.bf16.mxu1 %v4505_v5 }
 0x182   : > { %3890 = vmatpush3.bf16.msra.mxu0 %v4221_v62  ;;  %3910 = vmatpush3.bf16.msra.mxu1 %v4222_v63 }
 0x183   : > { %3891 = vmatprep.subr.bf16.mxu0 %v4505_v5  ;;  %3911 = vmatprep.subr.bf16.mxu1 %v4505_v5 }
 0x186   : > { %3892 = vmatpush3.bf16.msra.mxu0 %v4223_v0  ;;  %3912 = vmatpush3.bf16.msra.mxu1 %v4224_v3 }
 0x187   : > { %3893 = vmatprep.subr.bf16.mxu0 %v4505_v5  ;;  %3913 = vmatprep.subr.bf16.mxu1 %v4505_v5 }
 0x18a   : > { %3894 = vmatpush3.bf16.msra.mxu0 %v4225_v4  ;;  %3914 = vmatpush3.bf16.msra.mxu1 %v4226_v6 }
 0x18b   : > { %3895 = vmatprep.subr.bf16.mxu0 %v4505_v5  ;;  %3915 = vmatprep.subr.bf16.mxu1 %v4505_v5 }
 0x18e   : > { %3896 = vmatpush3.bf16.msra.mxu0 %v4227_v7  ;;  %3916 = vmatpush3.bf16.msra.mxu1 %v4228_v8 }
 0x18f   : > { %3897 = vmatprep.subr.bf16.mxu0 %v4505_v5  ;;  %3917 = vmatprep.subr.bf16.mxu1 %v4505_v5 }
 0x192   : > { %3898 = vmatpush3.bf16.msra.mxu0 %v4229_v9  ;;  %3918 = vmatpush3.bf16.msra.mxu1 %v4230_v10 }
 0x193   : > { %3899 = vmatprep.subr.bf16.mxu0 %v4505_v5  ;;  %3919 = vmatprep.subr.bf16.mxu1 %v4505_v5 }
 0x196   : > { %3900 = vmatpush3.bf16.msra.mxu0 %v4231_v11  ;;  %3920 = vmatpush3.bf16.msra.mxu1 %v4232_v12 }
 0x197   : > { %3925 = vmatprep.subr.bf16.mxu0 %v4505_v5  ;;  %3945 = vmatprep.subr.bf16.mxu1 %v4505_v5 }
 0x199   : > { %3902 = vmatmul.mubr.bf16.vlgmr.msra.gmra.mrb[8].mxu0 %v4711_v43  ;;  %3922 = vmatmul.mubr.bf16.vlgmr.msra.gmra.mrb[8].mxu1 %v4711_v43 }
 0x19a   : > { %3926 = vmatpush3.bf16.msra.mxu0 %v4233_v13  ;;  %3946 = vmatpush3.bf16.msra.mxu1 %v4234_v14 }
 0x19b   : > { %3927 = vmatprep.subr.bf16.mxu0 %v4505_v5  ;;  %3947 = vmatprep.subr.bf16.mxu1 %v4505_v5 }
 0x19c   : > { %3941 = vmatprep.mubr.msk.bf16.mxu0 %vm4506_vm0, %v4505_v5  ;;  %3961 = vmatprep.mubr.msk.bf16.mxu1 %vm4506_vm0, %v4505_v5 }
 0x19e   : > { %3928 = vmatpush3.bf16.msra.mxu0 %v4235_v15  ;;  %3948 = vmatpush3.bf16.msra.mxu1 %v4236_v16 }
 0x19f   : > { %3929 = vmatprep.subr.bf16.mxu0 %v4505_v5  ;;  %3949 = vmatprep.subr.bf16.mxu1 %v4505_v5 }
 0x1a2   : > { %3930 = vmatpush3.bf16.msra.mxu0 %v4237_v17  ;;  %3950 = vmatpush3.bf16.msra.mxu1 %v4238_v18 }
 0x1a3   : > { %3931 = vmatprep.subr.bf16.mxu0 %v4505_v5  ;;  %3951 = vmatprep.subr.bf16.mxu1 %v4505_v5 }
 0x1a6   : > { %3932 = vmatpush3.bf16.msra.mxu0 %v4239_v19  ;;  %3952 = vmatpush3.bf16.msra.mxu1 %v4240_v20 }
 0x1a7   : > { %3933 = vmatprep.subr.bf16.mxu0 %v4505_v5  ;;  %3953 = vmatprep.subr.bf16.mxu1 %v4505_v5 }
 0x1aa   : > { %3934 = vmatpush3.bf16.msra.mxu0 %v4241_v21  ;;  %3954 = vmatpush3.bf16.msra.mxu1 %v4242_v22 }
 0x1ab   : > { %3935 = vmatprep.subr.bf16.mxu0 %v4505_v5  ;;  %3955 = vmatprep.subr.bf16.mxu1 %v4505_v5 }
 0x1ae   : > { %3936 = vmatpush3.bf16.msra.mxu0 %v4243_v23  ;;  %3956 = vmatpush3.bf16.msra.mxu1 %v4244_v24 }
 0x1af   : > { %3937 = vmatprep.subr.bf16.mxu0 %v4505_v5  ;;  %3957 = vmatprep.subr.bf16.mxu1 %v4505_v5 }
 0x1b2   : > { %3938 = vmatpush3.bf16.msra.mxu0 %v4245_v25  ;;  %3958 = vmatpush3.bf16.msra.mxu1 %v4246_v26 }
 0x1b3   : > { %3939 = vmatprep.subr.bf16.mxu0 %v4505_v5  ;;  %3959 = vmatprep.subr.bf16.mxu1 %v4505_v5 }
 0x1b6   : > { %3940 = vmatpush3.bf16.msra.mxu0 %v4247_v27  ;;  %3960 = vmatpush3.bf16.msra.mxu1 %v4248_v28 }
 0x1b7   : > { %3965 = vmatprep.subr.bf16.mxu0 %v4505_v5  ;;  %3985 = vmatprep.subr.bf16.mxu1 %v4505_v5 }
 0x1b9   : > { %3942 = vmatmul.mubr.bf16.vlgmr.msra.gmra.mrb[12].mxu0 %v4711_v43  ;;  %3962 = vmatmul.mubr.bf16.vlgmr.msra.gmra.mrb[12].mxu1 %v4711_v43 }
 0x1ba   : > { %3966 = vmatpush3.bf16.msra.mxu0 %v4249_v29  ;;  %3986 = vmatpush3.bf16.msra.mxu1 %v4250_v30 }
 0x1bb   : > { %3967 = vmatprep.subr.bf16.mxu0 %v4505_v5  ;;  %3987 = vmatprep.subr.bf16.mxu1 %v4505_v5 }
 0x1bc   : > { %3981 = vmatprep.mubr.msk.bf16.mxu0 %vm4506_vm0, %v4505_v5  ;;  %4001 = vmatprep.mubr.msk.bf16.mxu1 %vm4506_vm0, %v4505_v5 }
 0x1be   : > { %3968 = vmatpush3.bf16.msra.mxu0 %v4251_v31  ;;  %3988 = vmatpush3.bf16.msra.mxu1 %v4252_v32 }
 0x1bf   : > { %3969 = vmatprep.subr.bf16.mxu0 %v4505_v5  ;;  %3989 = vmatprep.subr.bf16.mxu1 %v4505_v5 }
 0x1c2   : > { %3970 = vmatpush3.bf16.msra.mxu0 %v4253_v33  ;;  %3990 = vmatpush3.bf16.msra.mxu1 %v4254_v34 }
 0x1c3   : > { %3971 = vmatprep.subr.bf16.mxu0 %v4505_v5  ;;  %3991 = vmatprep.subr.bf16.mxu1 %v4505_v5 }
 0x1c6   : > { %3972 = vmatpush3.bf16.msra.mxu0 %v4255_v35  ;;  %3992 = vmatpush3.bf16.msra.mxu1 %v4256_v36 }
 0x1c7   : > { %3973 = vmatprep.subr.bf16.mxu0 %v4505_v5  ;;  %3993 = vmatprep.subr.bf16.mxu1 %v4505_v5 }
 0x1ca   : > { %3974 = vmatpush3.bf16.msra.mxu0 %v4257_v37  ;;  %3994 = vmatpush3.bf16.msra.mxu1 %v4258_v38 }
 0x1cb   : > { %3975 = vmatprep.subr.bf16.mxu0 %v4505_v5  ;;  %3995 = vmatprep.subr.bf16.mxu1 %v4505_v5 }
 0x1ce   : > { %3976 = vmatpush3.bf16.msra.mxu0 %v4259_v39  ;;  %3996 = vmatpush3.bf16.msra.mxu1 %v4260_v40 }
 0x1cf   : > { %3977 = vmatprep.subr.bf16.mxu0 %v4505_v5  ;;  %3997 = vmatprep.subr.bf16.mxu1 %v4505_v5 }
 0x1d2   : > { %3978 = vmatpush3.bf16.msra.mxu0 %v4261_v41  ;;  %3998 = vmatpush3.bf16.msra.mxu1 %v4262_v42 }
 0x1d3   : > { %3979 = vmatprep.subr.bf16.mxu0 %v4505_v5  ;;  %3999 = vmatprep.subr.bf16.mxu1 %v4505_v5 }
 0x1d6   : > { %3980 = vmatpush3.bf16.msra.mxu0 %v4263_v44  ;;  %4000 = vmatpush3.bf16.msra.mxu1 %v4264_v45 }
 0x1d9   : > { %3982 = vmatmul.mubr.bf16.vlgmr.msra.gmra.mrb[16].mxu0 %v4711_v43  ;;  %4002 = vmatmul.mubr.bf16.vlgmr.msra.gmra.mrb[16].mxu1 %v4711_v43 }
 0x22c   : > { %v521_v46 = vpop.f32.mrb[0].mxu0  ;;  %v627_v47 = vpop.f32.mrb[0].mxu1 }
 0x22d   : > { %v3823_v48 = vpop.f32.mrb[1].mxu0  ;;  %v3843_v49 = vpop.f32.mrb[1].mxu1 }
 0x22e   : > { %v524_v50 = vpop.f32.mrb[2].mxu0  ;;  %v630_v51 = vpop.f32.mrb[2].mxu1 }
 0x22f   : > { %v528_v52 = vpack.c.bf16 %v524_v50, %v521_v46  ;;  %v634_v53 = vpack.c.bf16 %v630_v51, %v627_v47  ;;  %v3824_v54 = vpop.f32.mrb[3].mxu0  ;;  %v3844_v55 = vpop.f32.mrb[3].mxu1 }
 0x231   : > { %4139 = vmatprep.subr.msk.bf16.mxu0 %vm1538_vm1, %v528_v52  ;;  %4140 = vmatprep.subr.msk.bf16.mxu1 %vm1538_vm1, %v528_v52  ;;  %v1564_v56 = vsel %vm1538_vm1, %v528_v52, 0  ;;  %v3592_v52 = vld [vmem:[%s5552_s1] sm:$0xff]  }
 0x232   : > { %4006 = vmatpush3.bf16.xpose.msra.mxu0 %v1564_v56  ;;  %4138 = vmatpush3.bf16.xpose.msra.mxu1 %v1564_v56  ;;  %v3593_v54 = vunpack.c.l.bf16 %v3592_v52 }
 0x233   : > { %4023 = vmatprep.subr.bf16.mxu1 %v634_v53  ;;  %4041 = vmatprep.subr.bf16.mxu0 %v4505_v5 }
 0x24c   : > { %v733_v43 = vpop.f32.mrb[4].mxu0  ;;  %v839_v57 = vpop.f32.mrb[4].mxu1 }
 0x24d   : > { %v3863_v58 = vpop.f32.mrb[5].mxu0  ;;  %v3883_v59 = vpop.f32.mrb[5].mxu1  ;;  %v1482_v62 = vmul.f32 0.125, %v733_v43  ;;  %v1484_v63 = vmul.f32 0.125, %v839_v57  ;;  %v3594_v43 = vunpack.c.h.bf16 %v3592_v52 }
 0x24e   : > { %v736_v60 = vpop.f32.mrb[6].mxu0  ;;  %v842_v61 = vpop.f32.mrb[6].mxu1 }
 0x24f   : > { %v1483_v0 = vmul.f32 0.125, %v736_v60  ;;  %v1485_v3 = vmul.f32 0.125, %v842_v61  ;;  %v3864_v4 = vpop.f32.mrb[7].mxu0  ;;  %v3884_v6 = vpop.f32.mrb[7].mxu1 }
 0x251   : > { %v1498_v7 = vpack.c.bf16 %v1483_v0, %v1482_v62  ;;  %v1499_v8 = vpack.c.bf16 %v1485_v3, %v1484_v63 }
 0x253   : > { %4007 = vmatprep.mubr.msk.bf16.mxu0 %vm1538_vm1, %v1498_v7 }
 0x254   : > { %4008 = vmatmul.mubr.msk.bf16.vlgmr.msra.gmra.mrb[20].mxu0 %vm1538_vm1, %v1499_v8  ;;  %v3629_v8 = vld [vmem:[%s5552_s1 + $0x10] sm:$0xff]  }
 0x26c   : > { %v945_v9 = vpop.f32.mrb[8].mxu0  ;;  %v1051_v10 = vpop.f32.mrb[8].mxu1 }
 0x26d   : > { %v3903_v11 = vpop.f32.mrb[9].mxu0  ;;  %v3923_v12 = vpop.f32.mrb[9].mxu1  ;;  %v1486_v15 = vmul.f32 0.125, %v945_v9  ;;  %v1488_v16 = vmul.f32 0.125, %v1051_v10  ;;  %v3630_v9 = vld [vmem:[%s5552_s1 + $0x18] sm:$0xff]   ;;  %v3601_v10 = vunpack.c.l.bf16 %v3629_v8 }
 0x26e   : > { %v948_v13 = vpop.f32.mrb[10].mxu0  ;;  %v1054_v14 = vpop.f32.mrb[10].mxu1  ;;  %v3605_v11 = vunpack.c.l.bf16 %v3630_v9 }
 0x26f   : > { %v1487_v17 = vmul.f32 0.125, %v948_v13  ;;  %v1489_v18 = vmul.f32 0.125, %v1054_v14  ;;  %v3904_v19 = vpop.f32.mrb[11].mxu0  ;;  %v3924_v20 = vpop.f32.mrb[11].mxu1  ;;  %v3602_v13 = vunpack.c.h.bf16 %v3629_v8 }
 0x271   : > { %v1500_v21 = vpack.c.bf16 %v1487_v17, %v1486_v15  ;;  %v1501_v22 = vpack.c.bf16 %v1489_v18, %v1488_v16  ;;  %v3606_v16 = vunpack.c.h.bf16 %v3630_v9 }
 0x273   : > { %4011 = vmatprep.mubr.msk.bf16.mxu0 %vm1538_vm1, %v1500_v21 }
 0x274   : > { %4012 = vmatmul.mubr.msk.bf16.gmra.mrb[24].mxu0 %vm1538_vm1, %v1501_v22 }
 0x275   : > { %4049 = vmatprep.mubr.msk.bf16.mxu0 %vm4506_vm0, %v4505_v5 }
 0x28c   : > { %v1157_v23 = vpop.f32.mrb[12].mxu0  ;;  %v1263_v24 = vpop.f32.mrb[12].mxu1 }
 0x28d   : > { %v3943_v25 = vpop.f32.mrb[13].mxu0  ;;  %v3963_v26 = vpop.f32.mrb[13].mxu1  ;;  %v1490_v29 = vmul.f32 0.125, %v1157_v23  ;;  %v1492_v30 = vmul.f32 0.125, %v1263_v24 }
 0x28e   : > { %v1160_v27 = vpop.f32.mrb[14].mxu0  ;;  %v1266_v28 = vpop.f32.mrb[14].mxu1  ;;  %v3631_v26 = vld [vmem:[%s5552_s1 + $0x20] sm:$0xff]  }
 0x28f   : > { %v1491_v31 = vmul.f32 0.125, %v1160_v27  ;;  %v1493_v32 = vmul.f32 0.125, %v1266_v28  ;;  %v3944_v33 = vpop.f32.mrb[15].mxu0  ;;  %v3964_v34 = vpop.f32.mrb[15].mxu1  ;;  %v3632_v27 = vld [vmem:[%s5552_s1 + $0x28] sm:$0xff]   ;;  %v3609_v28 = vunpack.c.l.bf16 %v3631_v26 }
 0x290   : > { %v3614_v34 = vunpack.c.h.bf16 %v3632_v27 }
 0x291   : > { %v1502_v35 = vpack.c.bf16 %v1491_v31, %v1490_v29  ;;  %v1503_v36 = vpack.c.bf16 %v1493_v32, %v1492_v30  ;;  %v3613_v29 = vunpack.c.l.bf16 %v3632_v27  ;;  %v3610_v31 = vunpack.c.h.bf16 %v3631_v26 }
 0x293   : > { %4015 = vmatprep.mubr.msk.bf16.mxu1 %vm1538_vm1, %v1502_v35 }
 0x294   : > { %4016 = vmatmul.mubr.msk.bf16.vlgmr.msra.gmra.mrb[20].mxu1 %vm1538_vm1, %v1503_v36 }
 0x295   : > { %4024 = vmatpush3.bf16.msra.mxu1 %v634_v53  ;;  %v3628_v53 = vld [vmem:[%s5552_s1 + $0x8] sm:$0xff]  }
 0x296   : > { %4053 = vmatprep.subr.bf16.mxu1 %v4505_v5  ;;  %v3597_v55 = vunpack.c.l.bf16 %v3628_v53  ;;  %v3598_v59 = vunpack.c.h.bf16 %v3628_v53 }
 0x2ac   : > { %v1369_v37 = vpop.f32.mrb[16].mxu0  ;;  %v1475_v38 = vpop.f32.mrb[16].mxu1 }
 0x2ad   : > { %v3983_v39 = vpop.f32.mrb[17].mxu0  ;;  %v4003_v40 = vpop.f32.mrb[17].mxu1  ;;  %v1494_v44 = vmul.f32 0.125, %v1369_v37  ;;  %v1496_v45 = vmul.f32 0.125, %v1475_v38 }
 0x2ae   : > { %v1372_v41 = vpop.f32.mrb[18].mxu0  ;;  %v1478_v42 = vpop.f32.mrb[18].mxu1 }
 0x2af   : > { %v1495_v46 = vmul.f32 0.125, %v1372_v41  ;;  %v1497_v47 = vmul.f32 0.125, %v1478_v42  ;;  %v3984_v48 = vpop.f32.mrb[19].mxu0  ;;  %v4004_v49 = vpop.f32.mrb[19].mxu1 }
 0x2b1   : > { %v1504_v50 = vpack.c.bf16 %v1495_v46, %v1494_v44  ;;  %v1505_v51 = vpack.c.bf16 %v1497_v47, %v1496_v45  ;;  %v3633_v45 = vld [vmem:[%s5552_s1 + $0x30] sm:$0xff]   ;;  %v3634_v46 = vld [vmem:[%s5552_s1 + $0x38] sm:$0xff]  }
 0x2b2   : > { %v3617_v47 = vunpack.c.l.bf16 %v3633_v45  ;;  %v3621_v48 = vunpack.c.l.bf16 %v3634_v46  ;;  %v3622_v53 = vunpack.c.h.bf16 %v3634_v46 }
 0x2b3   : > { %4019 = vmatprep.mubr.msk.bf16.mxu1 %vm1538_vm1, %v1504_v50  ;;  %v3618_v50 = vunpack.c.h.bf16 %v3633_v45 }
 0x2b4   : > { %4020 = vmatmul.mubr.msk.bf16.gmra.mrb[24].mxu1 %vm1538_vm1, %v1505_v51 }
 0x327   : > { %v4009_v56 = vpop.f32.mrb[20].mxu0 }
 0x328   : > { %v1600_v57 = vpop.f32.mrb[21].mxu0  ;;  %v5010_v62 = vadd.f32 %v4009_v56, %v3597_v55 }
 0x329   : > { %v5008_v58 = vadd.f32 %v3593_v54, %v1600_v57  ;;  %v4010_v60 = vpop.f32.mrb[22].mxu0 }
 0x32a   : > { %v1603_v61 = vpop.f32.mrb[23].mxu0  ;;  %v5016_v3 = vadd.f32 %v4010_v60, %v3598_v59  ;;  %v1670_v6 = vsel %vm1663_vm2, %v5010_v62, -inf }
 0x32b   : > { %v5012_v63 = vadd.f32 %v3594_v43, %v1603_v61  ;;  %v1664_v0 = vsel %vm1663_vm2, %v5008_v58, -inf }
 0x32c   : > { %1665 = vmax.xlane.f32.xlu0 %v1664_v0  ;;  %v1673_v7 = vsel %vm1663_vm2, %v5016_v3, -inf }
 0x32d   : > { %v1667_v4 = vsel %vm1663_vm2, %v5012_v63, -inf }
 0x32e   : > { %1668 = vmax.xlane.f32.xlu1 %v1667_v4 }
 0x330   : > { %1671 = vmax.xlane.f32.xlu0 %v1670_v6 }
 0x332   : > { %1674 = vmax.xlane.f32.xlu1 %v1673_v7 }
 0x347   : > { %v4013_v12 = vpop.f32.mrb[24].mxu0 }
 0x348   : > { %v1616_v14 = vpop.f32.mrb[25].mxu0  ;;  %v5032_v19 = vadd.f32 %v4013_v12, %v3605_v11 }
 0x349   : > { %v5030_v15 = vadd.f32 %v3601_v10, %v1616_v14  ;;  %v4014_v17 = vpop.f32.mrb[26].mxu0 }
 0x34a   : > { %v1619_v18 = vpop.f32.mrb[27].mxu0  ;;  %v5038_v22 = vadd.f32 %v4014_v17, %v3606_v16  ;;  %v1682_v24 = vsel %vm1663_vm2, %v5032_v19, -inf }
 0x34b   : > { %v5034_v20 = vadd.f32 %v3602_v13, %v1619_v18  ;;  %v1676_v21 = vsel %vm1663_vm2, %v5030_v15, -inf }
 0x34c   : > { %1677 = vmax.xlane.f32.xlu0 %v1676_v21  ;;  %v1685_v25 = vsel %vm1663_vm2, %v5038_v22, -inf }
 0x34d   : > { %v1679_v23 = vsel %vm1663_vm2, %v5034_v20, -inf }
 0x34e   : > { %1680 = vmax.xlane.f32.xlu1 %v1679_v23 }
 0x350   : > { %1683 = vmax.xlane.f32.xlu0 %v1682_v24 }
 0x352   : > { %1686 = vmax.xlane.f32.xlu1 %v1685_v25 }
 0x367   : > { %v4017_v30 = vpop.f32.mrb[20].mxu1 }
 0x368   : > { %v1632_v32 = vpop.f32.mrb[21].mxu1  ;;  %v5054_v37 = vadd.f32 %v4017_v30, %v3613_v29 }
 0x369   : > { %v5052_v33 = vadd.f32 %v3609_v28, %v1632_v32  ;;  %v4018_v35 = vpop.f32.mrb[22].mxu1 }
 0x36a   : > { %v1635_v36 = vpop.f32.mrb[23].mxu1  ;;  %v5060_v40 = vadd.f32 %v4018_v35, %v3614_v34  ;;  %v1694_v42 = vsel %vm1663_vm2, %v5054_v37, -inf }
 0x36b   : > { %v5056_v38 = vadd.f32 %v3610_v31, %v1635_v36  ;;  %v1688_v39 = vsel %vm1663_vm2, %v5052_v33, -inf }
 0x36c   : > { %1689 = vmax.xlane.f32.xlu0 %v1688_v39  ;;  %v1697_v44 = vsel %vm1663_vm2, %v5060_v40, -inf }
 0x36d   : > { %v1691_v41 = vsel %vm1663_vm2, %v5056_v38, -inf }
 0x36e   : > { %1692 = vmax.xlane.f32.xlu1 %v1691_v41 }
 0x370   : > { %1695 = vmax.xlane.f32.xlu0 %v1694_v42 }
 0x372   : > { %1698 = vmax.xlane.f32.xlu1 %v1697_v44 }
 0x387   : > { %v4021_v49 = vpop.f32.mrb[24].mxu1 }
 0x388   : > { %v1648_v51 = vpop.f32.mrb[25].mxu1  ;;  %v5076_v56 = vadd.f32 %v4021_v49, %v3621_v48 }
 0x389   : > { %v5074_v52 = vadd.f32 %v3617_v47, %v1648_v51  ;;  %v4022_v54 = vpop.f32.mrb[26].mxu1 }
 0x38a   : > { %v1651_v55 = vpop.f32.mrb[27].mxu1  ;;  %v5082_v59 = vadd.f32 %v4022_v54, %v3622_v53  ;;  %v1706_v61 = vsel %vm1663_vm2, %v5076_v56, -inf }
 0x38b   : > { %v5078_v43 = vadd.f32 %v3618_v50, %v1651_v55  ;;  %v1700_v57 = vsel %vm1663_vm2, %v5074_v52, -inf }
 0x38c   : > { %1701 = vmax.xlane.f32.xlu0 %v1700_v57  ;;  %v1709_v0 = vsel %vm1663_vm2, %v5082_v59, -inf }
 0x38d   : > { %v1703_v60 = vsel %vm1663_vm2, %v5078_v43, -inf }
 0x38e   : > { %1704 = vmax.xlane.f32.xlu1 %v1703_v60 }
 0x390   : > { %1707 = vmax.xlane.f32.xlu0 %v1706_v61 }
 0x392   : > { %1710 = vmax.xlane.f32.xlu1 %v1709_v0 }
 0x3b9   : > { %v1666_v4 = vpop.xlane.xlu0 %1665 }
 0x3ba   : > { %v1712_v6 = vsub.f32 %v5008_v58, %v1666_v4 }
 0x3bb   : > { %v1669_v7 = vpop.xlane.xlu1 %1668 }
 0x3bc   : > { %v1728_v8 = vmul.f32 1.442695, %v1712_v6  ;;  %v1713_v9 = vsub.f32 %v5012_v63, %v1669_v7 }
 0x3bd   : > { %v1672_v10 = vpop.xlane.xlu0 %1671 }
 0x3be   : > { %4365 = vpow2.f32 %v1728_v8  ;;  %v1730_v11 = vmul.f32 1.442695, %v1713_v9  ;;  %v1714_v12 = vsub.f32 %v5010_v62, %v1672_v10 }
 0x3bf   : > { %v1675_v13 = vpop.xlane.xlu1 %1674 }
 0x3c0   : > { %4367 = vpow2.f32 %v1730_v11  ;;  %v1732_v14 = vmul.f32 1.442695, %v1714_v12  ;;  %v1715_v16 = vsub.f32 %v5016_v3, %v1675_v13 }
 0x3c2   : > { %4369 = vpow2.f32 %v1732_v14  ;;  %v1734_v17 = vmul.f32 1.442695, %v1715_v16 }
 0x3c4   : > { %4371 = vpow2.f32 %v1734_v17 }
 0x3c8   : > { %v5094_v18 = vpop.eup %4365 }
 0x3c9   : > { %v1760_v58 = vsel %vm1663_vm2, %v5094_v18, 0.0 }
 0x3ca   : > { %v5098_v21 = vpop.eup %4367  ;;  %1761 = vadd.xlane.f32.xlu0 %v1760_v58 }
 0x3cb   : > { %v1763_v63 = vsel %vm1663_vm2, %v5098_v21, 0.0 }
 0x3cc   : > { %v5102_v62 = vpop.eup %4369  ;;  %1764 = vadd.xlane.f32.xlu1 %v1763_v63 }
 0x3cd   : > { %v1766_v3 = vsel %vm1663_vm2, %v5102_v62, 0.0 }
 0x3ce   : > { %v5106_v23 = vpop.eup %4371  ;;  %1767 = vadd.xlane.f32.xlu0 %v1766_v3 }
 0x3cf   : > { %v1769_v24 = vsel %vm1663_vm2, %v5106_v23, 0.0 }
 0x3d0   : > { %1770 = vadd.xlane.f32.xlu1 %v1769_v24 }
 0x3d9   : > { %v1678_v25 = vpop.xlane.xlu0 %1677 }
 0x3da   : > { %v1716_v26 = vsub.f32 %v5030_v15, %v1678_v25 }
 0x3db   : > { %v1681_v27 = vpop.xlane.xlu1 %1680 }
 0x3dc   : > { %v1736_v28 = vmul.f32 1.442695, %v1716_v26  ;;  %v1717_v29 = vsub.f32 %v5034_v20, %v1681_v27 }
 0x3dd   : > { %v1684_v30 = vpop.xlane.xlu0 %1683 }
 0x3de   : > { %4373 = vpow2.f32 %v1736_v28  ;;  %v1738_v31 = vmul.f32 1.442695, %v1717_v29  ;;  %v1718_v32 = vsub.f32 %v5032_v19, %v1684_v30  ;;  %v4265_v28 = vld [vmem:[%s5557_s6 + $0x20] sm:$0xff]   ;;  %v4267_v29 = vld [vmem:[%s5557_s6 + $0x28] sm:$0xff]   ;;  %v4269_v30 = vld [vmem:[%s5557_s6 + $0x30] sm:$0xff]  }
 0x3df   : > { %v1687_v34 = vpop.xlane.xlu1 %1686  ;;  %4042 = vmatpush3.bf16.msra.mxu0 %v4265_v28 }
 0x3e0   : > { %4375 = vpow2.f32 %v1738_v31  ;;  %v1740_v35 = vmul.f32 1.442695, %v1718_v32  ;;  %v1719_v36 = vsub.f32 %v5038_v22, %v1687_v34  ;;  %4043 = vmatprep.subr.bf16.mxu0 %v4505_v5 }
 0x3e2   : > { %4377 = vpow2.f32 %v1740_v35  ;;  %v1742_v39 = vmul.f32 1.442695, %v1719_v36 }
 0x3e3   : > { %4044 = vmatpush3.bf16.msra.mxu0 %v4267_v29 }
 0x3e4   : > { %4379 = vpow2.f32 %v1742_v39  ;;  %4045 = vmatprep.subr.bf16.mxu0 %v4505_v5 }
 0x3e7   : > { %4046 = vmatpush3.bf16.msra.mxu0 %v4269_v30 }
 0x3e8   : > { %v5114_v41 = vpop.eup %4373  ;;  %4047 = vmatprep.subr.bf16.mxu0 %v4505_v5 }
 0x3e9   : > { %v1772_v15 = vsel %vm1663_vm2, %v5114_v41, 0.0 }
 0x3ea   : > { %v5118_v42 = vpop.eup %4375  ;;  %1773 = vadd.xlane.f32.xlu0 %v1772_v15 }
 0x3eb   : > { %v1775_v20 = vsel %vm1663_vm2, %v5118_v42, 0.0 }
 0x3ec   : > { %v5122_v19 = vpop.eup %4377  ;;  %1776 = vadd.xlane.f32.xlu1 %v1775_v20 }
 0x3ed   : > { %v1778_v22 = vsel %vm1663_vm2, %v5122_v19, 0.0 }
 0x3ee   : > { %v5126_v44 = vpop.eup %4379  ;;  %1779 = vadd.xlane.f32.xlu0 %v1778_v22 }
 0x3ef   : > { %v1781_v45 = vsel %vm1663_vm2, %v5126_v44, 0.0 }
 0x3f0   : > { %1782 = vadd.xlane.f32.xlu1 %v1781_v45 }
 0x3f9   : > { %v1690_v46 = vpop.xlane.xlu0 %1689 }
 0x3fa   : > { %v1720_v47 = vsub.f32 %v5052_v33, %v1690_v46 }
 0x3fb   : > { %v1693_v48 = vpop.xlane.xlu1 %1692 }
 0x3fc   : > { %v1744_v49 = vmul.f32 1.442695, %v1720_v47  ;;  %v1721_v50 = vsub.f32 %v5056_v38, %v1693_v48 }
 0x3fd   : > { %v1696_v51 = vpop.xlane.xlu0 %1695 }
 0x3fe   : > { %4381 = vpow2.f32 %v1744_v49  ;;  %v1746_v53 = vmul.f32 1.442695, %v1721_v50  ;;  %v1722_v54 = vsub.f32 %v5054_v37, %v1696_v51  ;;  %v4266_v49 = vld [vmem:[%s5557_s6] sm:$0xff]  }
 0x3ff   : > { %v1699_v55 = vpop.xlane.xlu1 %1698 }
 0x400   : > { %4383 = vpow2.f32 %v1746_v53  ;;  %v1748_v57 = vmul.f32 1.442695, %v1722_v54  ;;  %v1723_v60 = vsub.f32 %v5060_v40, %v1699_v55 }
 0x402   : > { %4385 = vpow2.f32 %v1748_v57  ;;  %v1750_v61 = vmul.f32 1.442695, %v1723_v60 }
 0x404   : > { %4387 = vpow2.f32 %v1750_v61 }
 0x408   : > { %v5134_v0 = vpop.eup %4381 }
 0x409   : > { %v1784_v33 = vsel %vm1663_vm2, %v5134_v0, 0.0 }
 0x40a   : > { %v5138_v4 = vpop.eup %4383  ;;  %1785 = vadd.xlane.f32.xlu0 %v1784_v33 }
 0x40b   : > { %v1787_v38 = vsel %vm1663_vm2, %v5138_v4, 0.0 }
 0x40c   : > { %v5142_v37 = vpop.eup %4385  ;;  %1788 = vadd.xlane.f32.xlu1 %v1787_v38 }
 0x40d   : > { %v1790_v40 = vsel %vm1663_vm2, %v5142_v37, 0.0 }
 0x40e   : > { %v5146_v6 = vpop.eup %4387  ;;  %1791 = vadd.xlane.f32.xlu0 %v1790_v40 }
 0x40f   : > { %v1793_v7 = vsel %vm1663_vm2, %v5146_v6, 0.0 }
 0x410   : > { %1794 = vadd.xlane.f32.xlu1 %v1793_v7 }
 0x419   : > { %v1702_v8 = vpop.xlane.xlu0 %1701 }
 0x41a   : > { %v1724_v9 = vsub.f32 %v5074_v52, %v1702_v8 }
 0x41b   : > { %v1705_v10 = vpop.xlane.xlu1 %1704 }
 0x41c   : > { %v1752_v11 = vmul.f32 1.442695, %v1724_v9  ;;  %v1725_v12 = vsub.f32 %v5078_v43, %v1705_v10 }
 0x41d   : > { %v1708_v13 = vpop.xlane.xlu0 %1707 }
 0x41e   : > { %4389 = vpow2.f32 %v1752_v11  ;;  %v1754_v14 = vmul.f32 1.442695, %v1725_v12  ;;  %v1726_v16 = vsub.f32 %v5076_v56, %v1708_v13 }
 0x41f   : > { %v1711_v17 = vpop.xlane.xlu1 %1710 }
 0x420   : > { %4391 = vpow2.f32 %v1754_v14  ;;  %v1756_v58 = vmul.f32 1.442695, %v1726_v16  ;;  %v1727_v63 = vsub.f32 %v5082_v59, %v1711_v17 }
 0x422   : > { %4393 = vpow2.f32 %v1756_v58  ;;  %v1758_v3 = vmul.f32 1.442695, %v1727_v63 }
 0x424   : > { %4395 = vpow2.f32 %v1758_v3 }
 0x428   : > { %v5154_v24 = vpop.eup %4389 }
 0x429   : > { %v1796_v52 = vsel %vm1663_vm2, %v5154_v24, 0.0 }
 0x42a   : > { %v5158_v25 = vpop.eup %4391  ;;  %1797 = vadd.xlane.f32.xlu0 %v1796_v52 }
 0x42b   : > { %v1799_v43 = vsel %vm1663_vm2, %v5158_v25, 0.0 }
 0x42c   : > { %v5162_v56 = vpop.eup %4393  ;;  %1800 = vadd.xlane.f32.xlu1 %v1799_v43 }
 0x42d   : > { %v1802_v59 = vsel %vm1663_vm2, %v5162_v56, 0.0 }
 0x42e   : > { %v5166_v26 = vpop.eup %4395  ;;  %1803 = vadd.xlane.f32.xlu0 %v1802_v59 }
 0x42f   : > { %v1805_v27 = vsel %vm1663_vm2, %v5166_v26, 0.0 }
 0x430   : > { %1806 = vadd.xlane.f32.xlu1 %v1805_v27 }
 0x457   : > { %v1762_v31 = vpop.xlane.xlu0 %1761 }
 0x458   : > { %4397 = vrcp.f32 %v1762_v31 }
 0x459   : > { %v1765_v32 = vpop.xlane.xlu1 %1764 }
 0x45a   : > { %4399 = vrcp.f32 %v1765_v32 }
 0x45b   : > { %v1768_v34 = vpop.xlane.xlu0 %1767 }
 0x45c   : > { %4401 = vrcp.f32 %v1768_v34 }
 0x45d   : > { %v1771_v35 = vpop.xlane.xlu1 %1770 }
 0x45e   : > { %4403 = vrcp.f32 %v1771_v35 }
 0x462   : > { %v4398_v36 = vpop.eup %4397 }
 0x463   : > { %v1824_v15 = vmul.f32 %v4398_v36, %v5094_v18  ;;  %v4268_v18 = vld [vmem:[%s5557_s6 + $0x8] sm:$0xff]  }
 0x464   : > { %v4400_v39 = vpop.eup %4399 }
 0x465   : > { %v1825_v20 = vmul.f32 %v4400_v39, %v5098_v21  ;;  %v4270_v21 = vld [vmem:[%s5557_s6 + $0x10] sm:$0xff]   ;;  %v4274_v39 = vld [vmem:[%s5557_s6 + $0x40] sm:$0xff]  }
 0x466   : > { %v4402_v22 = vpop.eup %4401 }
 0x467   : > { %v1840_v45 = vpack.c.bf16 %v1825_v20, %v1824_v15  ;;  %v1826_v47 = vmul.f32 %v4402_v22, %v5102_v62  ;;  %v4276_v22 = vld [vmem:[%s5557_s6 + $0x48] sm:$0xff]  }
 0x468   : > { %v4404_v46 = vpop.eup %4403 }
 0x469   : > { %v1827_v48 = vmul.f32 %v4404_v46, %v5106_v23  ;;  %4025 = vmatprep.mubr.msk.bf16.mxu1 %vm1663_vm2, %v1840_v45  ;;  %v4275_v45 = vld [vmem:[%s5557_s6 + $0x68] sm:$0xff]   ;;  %v4278_v46 = vld [vmem:[%s5557_s6 + $0x50] sm:$0xff]  }
 0x46b   : > { %v1841_v50 = vpack.c.bf16 %v1827_v48, %v1826_v47  ;;  %v4277_v47 = vld [vmem:[%s5557_s6 + $0x70] sm:$0xff]   ;;  %v4280_v48 = vld [vmem:[%s5557_s6 + $0x58] sm:$0xff]  }
 0x46d   : > { %4026 = vmatmul.mubr.msk.bf16.vlgmr.msra.gmra.mrb[28].mxu1 %vm1663_vm2, %v1841_v50 }
 0x46e   : > { %4054 = vmatpush3.bf16.msra.mxu1 %v4266_v49  ;;  %v4279_v49 = vld [vmem:[%s5557_s6 + $0x78] sm:$0xff]  }
 0x46f   : > { %4055 = vmatprep.subr.bf16.mxu1 %v4505_v5 }
 0x472   : > { %4056 = vmatpush3.bf16.msra.mxu1 %v4268_v18 }
 0x473   : > { %4057 = vmatprep.subr.bf16.mxu1 %v4505_v5 }
 0x476   : > { %4058 = vmatpush3.bf16.msra.mxu1 %v4270_v21 }
 0x477   : > { %v1774_v62 = vpop.xlane.xlu0 %1773  ;;  %4059 = vmatprep.subr.bf16.mxu1 %v4505_v5 }
 0x478   : > { %4405 = vrcp.f32 %v1774_v62  ;;  %v4281_v62 = vld [vmem:[%s5557_s6 + $0xa0] sm:$0xff]  }
 0x479   : > { %v1777_v23 = vpop.xlane.xlu1 %1776 }
 0x47a   : > { %4407 = vrcp.f32 %v1777_v23 }
 0x47b   : > { %v1780_v51 = vpop.xlane.xlu0 %1779 }
 0x47c   : > { %4409 = vrcp.f32 %v1780_v51 }
 0x47d   : > { %v1783_v53 = vpop.xlane.xlu1 %1782 }
 0x47e   : > { %4411 = vrcp.f32 %v1783_v53  ;;  %v4282_v53 = vld [vmem:[%s5557_s6 + $0x80] sm:$0xff]  }
 0x482   : > { %v4406_v54 = vpop.eup %4405 }
 0x483   : > { %v1828_v57 = vmul.f32 %v4406_v54, %v5114_v41 }
 0x484   : > { %v4408_v55 = vpop.eup %4407 }
 0x485   : > { %v1829_v60 = vmul.f32 %v4408_v55, %v5118_v42  ;;  %v4283_v55 = vld [vmem:[%s5557_s6 + $0xa8] sm:$0xff]  }
 0x486   : > { %v4410_v61 = vpop.eup %4409 }
 0x487   : > { %v1842_v33 = vpack.c.bf16 %v1829_v60, %v1828_v57  ;;  %v1830_v40 = vmul.f32 %v4410_v61, %v5122_v19  ;;  %v4284_v57 = vld [vmem:[%s5557_s6 + $0x88] sm:$0xff]   ;;  %v4285_v60 = vld [vmem:[%s5557_s6 + $0xb0] sm:$0xff]  }
 0x488   : > { %v4412_v38 = vpop.eup %4411  ;;  %v4286_v61 = vld [vmem:[%s5557_s6 + $0x90] sm:$0xff]  }
 0x489   : > { %4029 = vmatprep.mubr.msk.bf16.mxu1 %vm1663_vm2, %v1842_v33  ;;  %v1831_v7 = vmul.f32 %v4412_v38, %v5126_v44  ;;  %v4287_v33 = vld [vmem:[%s5557_s6 + $0xb8] sm:$0xff]  }
 0x48a   : > { %v4288_v38 = vld [vmem:[%s5557_s6 + $0x98] sm:$0xff]  }
 0x48b   : > { %v1843_v8 = vpack.c.bf16 %v1831_v7, %v1830_v40 }
 0x48d   : > { %4030 = vmatmul.mubr.msk.bf16.gmra.mrb[32].mxu1 %vm1663_vm2, %v1843_v8 }
 0x497   : > { %v1786_v9 = vpop.xlane.xlu0 %1785 }
 0x498   : > { %4413 = vrcp.f32 %v1786_v9  ;;  %v4289_v9 = vld [vmem:[%s5557_s6 + $0xe0] sm:$0xff]  }
 0x499   : > { %v1789_v10 = vpop.xlane.xlu1 %1788 }
 0x49a   : > { %4415 = vrcp.f32 %v1789_v10 }
 0x49b   : > { %v1792_v11 = vpop.xlane.xlu0 %1791 }
 0x49c   : > { %4417 = vrcp.f32 %v1792_v11 }
 0x49d   : > { %v1795_v41 = vpop.xlane.xlu1 %1794 }
 0x49e   : > { %4419 = vrcp.f32 %v1795_v41  ;;  %v4290_v41 = vld [vmem:[%s5557_s6 + $0xc0] sm:$0xff]  }
 0x4a2   : > { %v4414_v42 = vpop.eup %4413 }
 0x4a3   : > { %v1832_v13 = vmul.f32 %v4414_v42, %v5134_v0 }
 0x4a4   : > { %v4416_v12 = vpop.eup %4415 }
 0x4a5   : > { %v1833_v14 = vmul.f32 %v4416_v12, %v5138_v4  ;;  %v4271_v4 = vld [vmem:[%s5557_s6 + $0x38] sm:$0xff]   ;;  %v4291_v12 = vld [vmem:[%s5557_s6 + $0xe8] sm:$0xff]  }
 0x4a6   : > { %v4418_v19 = vpop.eup %4417  ;;  %4048 = vmatpush3.bf16.msra.mxu0 %v4271_v4 }
 0x4a7   : > { %v1844_v16 = vpack.c.bf16 %v1833_v14, %v1832_v13  ;;  %v1834_v17 = vmul.f32 %v4418_v19, %v5142_v37  ;;  %v4272_v37 = vld [vmem:[%s5557_s6 + $0x18] sm:$0xff]   ;;  %4065 = vmatprep.subr.bf16.mxu0 %v4505_v5  ;;  %v4292_v13 = vld [vmem:[%s5557_s6 + $0xc8] sm:$0xff]   ;;  %v4293_v14 = vld [vmem:[%s5557_s6 + $0xf0] sm:$0xff]  }
 0x4a8   : > { %v4420_v44 = vpop.eup %4419  ;;  %4060 = vmatpush3.bf16.msra.mxu1 %v4272_v37  ;;  %v4294_v19 = vld [vmem:[%s5557_s6 + $0xd0] sm:$0xff]  }
 0x4a9   : > { %4033 = vmatprep.mubr.msk.bf16.mxu1 %vm1663_vm2, %v1844_v16  ;;  %v1835_v58 = vmul.f32 %v4420_v44, %v5146_v6  ;;  %4077 = vmatprep.subr.bf16.mxu1 %v4505_v5  ;;  %v4295_v16 = vld [vmem:[%s5557_s6 + $0xf8] sm:$0xff]  }
 0x4aa   : > { %v4296_v44 = vld [vmem:[%s5557_s6 + $0xd8] sm:$0xff]  }
 0x4ab   : > { %v1845_v63 = vpack.c.bf16 %v1835_v58, %v1834_v17 }
 0x4ad   : > { %4034 = vmatmul.mubr.msk.bf16.gmra.mrb[36].mxu1 %vm1663_vm2, %v1845_v63 }
 0x4b7   : > { %v1798_v3 = vpop.xlane.xlu0 %1797 }
 0x4b8   : > { %4421 = vrcp.f32 %v1798_v3 }
 0x4b9   : > { %v1801_v52 = vpop.xlane.xlu1 %1800 }
 0x4ba   : > { %4423 = vrcp.f32 %v1801_v52 }
 0x4bb   : > { %v1804_v43 = vpop.xlane.xlu0 %1803 }
 0x4bc   : > { %4425 = vrcp.f32 %v1804_v43 }
 0x4bd   : > { %v1807_v0 = vpop.xlane.xlu1 %1806 }
 0x4be   : > { %4427 = vrcp.f32 %v1807_v0 }
 0x4c2   : > { %v4422_v59 = vpop.eup %4421 }
 0x4c3   : > { %v1836_v27 = vmul.f32 %v4422_v59, %v5154_v24 }
 0x4c4   : > { %v4424_v6 = vpop.eup %4423 }
 0x4c5   : > { %v1837_v28 = vmul.f32 %v4424_v6, %v5158_v25 }
 0x4c6   : > { %v4426_v29 = vpop.eup %4425 }
 0x4c7   : > { %v1846_v30 = vpack.c.bf16 %v1837_v28, %v1836_v27  ;;  %v1838_v32 = vmul.f32 %v4426_v29, %v5162_v56  ;;  %v4273_v56 = vld [vmem:[%s5557_s6 + $0x60] sm:$0xff]  }
 0x4c8   : > { %v4428_v31 = vpop.eup %4427 }
 0x4c9   : > { %4037 = vmatprep.mubr.msk.bf16.mxu1 %vm1663_vm2, %v1846_v30  ;;  %v1839_v34 = vmul.f32 %v4428_v31, %v5166_v26 }
 0x4cb   : > { %v1847_v35 = vpack.c.bf16 %v1839_v34, %v1838_v32 }
 0x4cd   : > { %4038 = vmatmul.mubr.msk.bf16.gmra.mrb[40].mxu1 %vm1663_vm2, %v1847_v35 }
 0x4ce   : > { %4061 = vmatprep.mubr.msk.bf16.mxu1 %vm4506_vm0, %v4505_v5 }
 0x540   : > { %v4027_v24 = vpop.f32.mrb[28].mxu1 }
 0x541   : > { %v1906_v36 = vpop.f32.mrb[29].mxu1 }
 0x542   : > { %v4028_v25 = vpop.f32.mrb[30].mxu1 }
 0x543   : > { %v1978_v15 = vpack.c.bf16 %v4028_v25, %v4027_v24  ;;  %v1909_v20 = vpop.f32.mrb[31].mxu1 }
 0x544   : > { %v1969_v26 = vpack.c.bf16 %v1909_v20, %v1906_v36 }
 0x545   : > { %4050 = vmatmul.mubr.msk.bf16.vlgmr.msra.gmra.mrb[28].mxu0 %vm1538_vm1, %v1978_v15 }
 0x546   : > { %4062 = vmatmul.mubr.msk.bf16.vlgmr.msra.gmra.mrb[44].mxu1 %vm1538_vm1, %v1969_v26  ;;  %4066 = vmatpush3.bf16.msra.mxu0 %v4274_v39 }
 0x547   : > { %4078 = vmatpush3.bf16.msra.mxu1 %v4273_v56  ;;  %4067 = vmatprep.subr.bf16.mxu0 %v4505_v5 }
 0x548   : > { %4079 = vmatprep.subr.bf16.mxu1 %v4505_v5  ;;  %4085 = vmatprep.mubr.msk.bf16.mxu1 %vm4506_vm0, %v4505_v5 }
 0x549   : > { %4073 = vmatprep.mubr.msk.bf16.mxu0 %vm4506_vm0, %v4505_v5 }
 0x54a   : > { %4068 = vmatpush3.bf16.msra.mxu0 %v4276_v22 }
 0x54b   : > { %4080 = vmatpush3.bf16.msra.mxu1 %v4275_v45  ;;  %4069 = vmatprep.subr.bf16.mxu0 %v4505_v5 }
 0x54c   : > { %4081 = vmatprep.subr.bf16.mxu1 %v4505_v5 }
 0x54e   : > { %4070 = vmatpush3.bf16.msra.mxu0 %v4278_v46 }
 0x54f   : > { %4082 = vmatpush3.bf16.msra.mxu1 %v4277_v47  ;;  %4071 = vmatprep.subr.bf16.mxu0 %v4505_v5 }
 0x550   : > { %4083 = vmatprep.subr.bf16.mxu1 %v4505_v5 }
 0x552   : > { %4072 = vmatpush3.bf16.msra.mxu0 %v4280_v48 }
 0x553   : > { %4084 = vmatpush3.bf16.msra.mxu1 %v4279_v49  ;;  %4089 = vmatprep.subr.bf16.mxu0 %v4505_v5 }
 0x554   : > { %4101 = vmatprep.subr.bf16.mxu1 %v4505_v5 }
 0x560   : > { %v4031_v50 = vpop.f32.mrb[32].mxu1 }
 0x561   : > { %v1922_v18 = vpop.f32.mrb[33].mxu1 }
 0x562   : > { %v4032_v21 = vpop.f32.mrb[34].mxu1 }
 0x563   : > { %v2204_v23 = vpack.c.bf16 %v4032_v21, %v4031_v50  ;;  %v1925_v51 = vpop.f32.mrb[35].mxu1 }
 0x564   : > { %v2124_v54 = vpack.c.bf16 %v1925_v51, %v1922_v18 }
 0x565   : > { %4086 = vmatmul.mubr.msk.bf16.vlgmr.msra.gmra.mrb[48].mxu1 %vm1538_vm1, %v2204_v23 }
 0x566   : > { %4074 = vmatmul.mubr.msk.bf16.vlgmr.msra.gmra.mrb[32].mxu0 %vm1538_vm1, %v2124_v54  ;;  %4102 = vmatpush3.bf16.msra.mxu1 %v4281_v62 }
 0x567   : > { %4090 = vmatpush3.bf16.msra.mxu0 %v4282_v53  ;;  %4103 = vmatprep.subr.bf16.mxu1 %v4505_v5 }
 0x568   : > { %4091 = vmatprep.subr.bf16.mxu0 %v4505_v5  ;;  %4109 = vmatprep.mubr.msk.bf16.mxu1 %vm4506_vm0, %v4505_v5 }
 0x569   : > { %4097 = vmatprep.mubr.msk.bf16.mxu0 %vm4506_vm0, %v4505_v5 }
 0x56a   : > { %4104 = vmatpush3.bf16.msra.mxu1 %v4283_v55 }
 0x56b   : > { %4092 = vmatpush3.bf16.msra.mxu0 %v4284_v57  ;;  %4105 = vmatprep.subr.bf16.mxu1 %v4505_v5 }
 0x56c   : > { %4093 = vmatprep.subr.bf16.mxu0 %v4505_v5 }
 0x56e   : > { %4106 = vmatpush3.bf16.msra.mxu1 %v4285_v60 }
 0x56f   : > { %4094 = vmatpush3.bf16.msra.mxu0 %v4286_v61  ;;  %4107 = vmatprep.subr.bf16.mxu1 %v4505_v5 }
 0x570   : > { %4095 = vmatprep.subr.bf16.mxu0 %v4505_v5 }
 0x572   : > { %4108 = vmatpush3.bf16.msra.mxu1 %v4287_v33 }
 0x573   : > { %4096 = vmatpush3.bf16.msra.mxu0 %v4288_v38  ;;  %4125 = vmatprep.subr.bf16.mxu1 %v4505_v5 }
 0x574   : > { %4113 = vmatprep.subr.bf16.mxu0 %v4505_v5 }
 0x580   : > { %v4035_v40 = vpop.f32.mrb[36].mxu1 }
 0x581   : > { %v1938_v7 = vpop.f32.mrb[37].mxu1 }
 0x582   : > { %v4036_v8 = vpop.f32.mrb[38].mxu1 }
 0x583   : > { %v2364_v10 = vpack.c.bf16 %v4036_v8, %v4035_v40  ;;  %v1941_v11 = vpop.f32.mrb[39].mxu1 }
 0x584   : > { %v2284_v42 = vpack.c.bf16 %v1941_v11, %v1938_v7 }
 0x585   : > { %4110 = vmatmul.mubr.msk.bf16.vlgmr.msra.gmra.mrb[52].mxu1 %vm1538_vm1, %v2364_v10 }
 0x586   : > { %4098 = vmatmul.mubr.msk.bf16.vlgmr.msra.gmra.mrb[36].mxu0 %vm1538_vm1, %v2284_v42  ;;  %4126 = vmatpush3.bf16.msra.mxu1 %v4289_v9  ;;  %v4299_v42 = vld [vmem:[%s5559_s8 + $0x4] ss:$8 sps:$4 sm:$0xff]  }
 0x587   : > { %4114 = vmatpush3.bf16.msra.mxu0 %v4290_v41  ;;  %4127 = vmatprep.subr.bf16.mxu1 %v4505_v5  ;;  %v4297_v41 = vld [vmem:[%s5559_s8] ss:$8 sps:$4 sm:$0xff]  }
 0x588   : > { %4115 = vmatprep.subr.bf16.mxu0 %v4505_v5  ;;  %4133 = vmatprep.mubr.msk.bf16.mxu1 %vm4506_vm0, %v4505_v5 }
 0x589   : > { %4121 = vmatprep.mubr.msk.bf16.mxu0 %vm4506_vm0, %v4505_v5 }
 0x58a   : > { %4128 = vmatpush3.bf16.msra.mxu1 %v4291_v12  ;;  %v4302_v12 = vld [vmem:[%s5560_s9 + $0x4] ss:$8 sps:$4 sm:$0xff]  }
 0x58b   : > { %4116 = vmatpush3.bf16.msra.mxu0 %v4292_v13  ;;  %4129 = vmatprep.subr.bf16.mxu1 %v4505_v5  ;;  %v4308_v13 = vld [vmem:[%s5560_s9 + $0x14] ss:$8 sps:$4 sm:$0xff]  }
 0x58c   : > { %4117 = vmatprep.subr.bf16.mxu0 %v4505_v5 }
 0x58e   : > { %4130 = vmatpush3.bf16.msra.mxu1 %v4293_v14  ;;  %v4303_v14 = vld [vmem:[%s5559_s8 + $0x10] ss:$8 sps:$4 sm:$0xff]  }
 0x58f   : > { %4118 = vmatpush3.bf16.msra.mxu0 %v4294_v19  ;;  %4131 = vmatprep.subr.bf16.mxu1 %v4505_v5  ;;  %v4306_v19 = vld [vmem:[%s5560_s9 + $0x10] ss:$8 sps:$4 sm:$0xff]  }
 0x590   : > { %4119 = vmatprep.subr.bf16.mxu0 %v4505_v5 }
 0x592   : > { %4132 = vmatpush3.bf16.msra.mxu1 %v4295_v16  ;;  %v4311_v16 = vld [vmem:[%s5559_s8 + $0x24] ss:$8 sps:$4 sm:$0xff]  }
 0x593   : > { %4120 = vmatpush3.bf16.msra.mxu0 %v4296_v44  ;;  %2873 = vmatprep.subr.bf16.mxu1 %v4302_v12  ;;  %v4314_v44 = vld [vmem:[%s5560_s9 + $0x24] ss:$8 sps:$4 sm:$0xff]  }
 0x594   : > { %2734 = vmatprep.subr.bf16.mxu0 %v4299_v42  ;;  %v4353_v42 = vld [vmem:[%s5561_s10 + $0x60] sm:$0xff]   ;;  %v4355_v12 = vld [vmem:[%s5561_s10 + $0x68] sm:$0xff]  }
 0x5a0   : > { %v4039_v17 = vpop.f32.mrb[40].mxu1 }
 0x5a1   : > { %v1954_v58 = vpop.f32.mrb[41].mxu1 }
 0x5a2   : > { %v4040_v63 = vpop.f32.mrb[42].mxu1 }
 0x5a3   : > { %v2524_v3 = vpack.c.bf16 %v4040_v63, %v4039_v17  ;;  %v1957_v52 = vpop.f32.mrb[43].mxu1  ;;  %v4309_v17 = vld [vmem:[%s5559_s8 + $0x20] ss:$8 sps:$4 sm:$0xff]  }
 0x5a4   : > { %v2444_v43 = vpack.c.bf16 %v1957_v52, %v1954_v58  ;;  %v4312_v58 = vld [vmem:[%s5560_s9 + $0x20] ss:$8 sps:$4 sm:$0xff]  }
 0x5a5   : > { %4134 = vmatmul.mubr.msk.bf16.vlgmr.msra.gmra.mrb[56].mxu1 %vm1538_vm1, %v2524_v3 }
 0x5a6   : > { %4122 = vmatmul.mubr.msk.bf16.vlgmr.msra.gmra.mrb[40].mxu0 %vm1538_vm1, %v2444_v43 }
 0x5a7   : > { %2735 = vmatpush1.bf16.msra.mxu0 %v4297_v41  ;;  %v4352_v41 = vld [vmem:[%s5561_s10 + $0x18] sm:$0xff]  }
 0x618   : > { %v2049_v0 = vpop.f32.mrb[28].mxu0 }
 0x619   : > { %v4051_v4 = vpop.f32.mrb[29].mxu0  ;;  %v2117_v59 = vpop.f32.mrb[44].mxu1 }
 0x61a   : > { %v2118_v37 = vadd.f32 %v2117_v59, %v2049_v0  ;;  %v2052_v6 = vpop.f32.mrb[30].mxu0  ;;  %v4063_v27 = vpop.f32.mrb[45].mxu1 }
 0x61b   : > { %v4052_v28 = vpop.f32.mrb[31].mxu0  ;;  %v2120_v5 = vpop.f32.mrb[46].mxu1  ;;  %v4320_v27 = vld [vmem:[%s5560_s9 + $0x34] ss:$8 sps:$4 sm:$0xff]  }
 0x61c   : > { %v2121_v29 = vadd.f32 %v2120_v5, %v2052_v6  ;;  %v4064_v30 = vpop.f32.mrb[47].mxu1  ;;  %v4317_v6 = vld [vmem:[%s5559_s8 + $0x34] ss:$8 sps:$4 sm:$0xff]   ;;  %v4315_v28 = vld [vmem:[%s5559_s8 + $0x30] ss:$8 sps:$4 sm:$0xff]  }
 0x61d   : > { %v4318_v5 = vld [vmem:[%s5560_s9 + $0x30] ss:$8 sps:$4 sm:$0xff]   ;;  %v4323_v30 = vld [vmem:[%s5559_s8 + $0x44] ss:$8 sps:$4 sm:$0xff]  }
 0x638   : > { %v2275_v31 = vpop.f32.mrb[48].mxu1 }
 0x639   : > { %v2195_v32 = vpop.f32.mrb[32].mxu0  ;;  %v4087_v34 = vpop.f32.mrb[49].mxu1 }
 0x63a   : > { %v2202_v35 = vadd.f32 %v2195_v32, %v2118_v37  ;;  %v4075_v24 = vpop.f32.mrb[33].mxu0  ;;  %v2278_v36 = vpop.f32.mrb[50].mxu1  ;;  %v4326_v32 = vld [vmem:[%s5560_s9 + $0x44] ss:$8 sps:$4 sm:$0xff]   ;;  %v4329_v34 = vld [vmem:[%s5559_s8 + $0x54] ss:$8 sps:$4 sm:$0xff]  }
 0x63b   : > { %v2198_v25 = vpop.f32.mrb[34].mxu0  ;;  %v4088_v39 = vpop.f32.mrb[51].mxu1  ;;  %v4327_v24 = vld [vmem:[%s5559_s8 + $0x50] ss:$8 sps:$4 sm:$0xff]  }
 0x63c   : > { %v2203_v15 = vadd.f32 %v2198_v25, %v2121_v29  ;;  %v4076_v20 = vpop.f32.mrb[35].mxu0  ;;  %v2282_v56 = vadd.f32 %v2275_v31, %v2202_v35  ;;  %v4321_v29 = vld [vmem:[%s5559_s8 + $0x40] ss:$8 sps:$4 sm:$0xff]   ;;  %v4332_v35 = vld [vmem:[%s5560_s9 + $0x54] ss:$8 sps:$4 sm:$0xff]  }
 0x63d   : > { %v4324_v31 = vld [vmem:[%s5560_s9 + $0x40] ss:$8 sps:$4 sm:$0xff]   ;;  %v4335_v25 = vld [vmem:[%s5559_s8 + $0x64] ss:$8 sps:$4 sm:$0xff]  }
 0x63e   : > { %v2283_v26 = vadd.f32 %v2278_v36, %v2203_v15  ;;  %v4330_v36 = vld [vmem:[%s5560_s9 + $0x50] ss:$8 sps:$4 sm:$0xff]   ;;  %v4338_v39 = vld [vmem:[%s5560_s9 + $0x64] ss:$8 sps:$4 sm:$0xff]   ;;  %v4507_v15 = vmov 0  }
 0x63f   : > { %2766 = vmatprep.mubr.bf16.mxu0 %v4507_v15  ;;  %2905 = vmatprep.mubr.bf16.mxu1 %v4507_v15  ;;  %v4333_v20 = vld [vmem:[%s5559_s8 + $0x60] ss:$8 sps:$4 sm:$0xff]  }
 0x658   : > { %v2435_v22 = vpop.f32.mrb[52].mxu1 }
 0x659   : > { %v2355_v45 = vpop.f32.mrb[36].mxu0  ;;  %v4111_v46 = vpop.f32.mrb[53].mxu1 }
 0x65a   : > { %v2362_v47 = vadd.f32 %v2355_v45, %v2282_v56  ;;  %v4099_v48 = vpop.f32.mrb[37].mxu0  ;;  %v2438_v49 = vpop.f32.mrb[54].mxu1  ;;  %v4336_v56 = vld [vmem:[%s5560_s9 + $0x60] ss:$8 sps:$4 sm:$0xff]   ;;  %v4339_v45 = vld [vmem:[%s5559_s8 + $0x70] ss:$8 sps:$4 sm:$0xff]  }
 0x65b   : > { %v2358_v50 = vpop.f32.mrb[38].mxu0  ;;  %v4112_v18 = vpop.f32.mrb[55].mxu1  ;;  %v4342_v46 = vld [vmem:[%s5560_s9 + $0x70] ss:$8 sps:$4 sm:$0xff]  }
 0x65c   : > { %v2363_v21 = vadd.f32 %v2358_v50, %v2283_v26  ;;  %v4100_v62 = vpop.f32.mrb[39].mxu0  ;;  %v2442_v23 = vadd.f32 %v2435_v22, %v2362_v47  ;;  %v4341_v26 = vld [vmem:[%s5559_s8 + $0x74] ss:$8 sps:$4 sm:$0xff]  }
 0x65d   : > { %v4344_v22 = vld [vmem:[%s5560_s9 + $0x74] ss:$8 sps:$4 sm:$0xff]  }
 0x65e   : > { %v2443_v51 = vadd.f32 %v2438_v49, %v2363_v21 }
 0x678   : > { %v2595_v53 = vpop.f32.mrb[56].mxu1 }
 0x679   : > { %v2515_v54 = vpop.f32.mrb[40].mxu0  ;;  %v4135_v55 = vpop.f32.mrb[57].mxu1 }
 0x67a   : > { %v2522_v57 = vadd.f32 %v2515_v54, %v2442_v23  ;;  %v4123_v60 = vpop.f32.mrb[41].mxu0  ;;  %v2598_v61 = vpop.f32.mrb[58].mxu1 }
 0x67b   : > { %v2518_v33 = vpop.f32.mrb[42].mxu0  ;;  %v4136_v38 = vpop.f32.mrb[59].mxu1 }
 0x67c   : > { %v2602_v40 = vadd.f32 %v2595_v53, %v2522_v57  ;;  %v2523_v7 = vadd.f32 %v2518_v33, %v2443_v51  ;;  %v4124_v8 = vpop.f32.mrb[43].mxu0  ;;  %v3527_v53 = vld [vmem:[%s5558_s7] ss:$0 sm:$0xff]  ;;  %v4347_v38 = vld [vmem:[%s5561_s10 + $0x48] sm:$0xff]  }
 0x67d   : > { %v4346_v33 = vld [vmem:[%s5561_s10] sm:$0xff]   ;;  %v4350_v8 = vld [vmem:[%s5561_s10 + $0x10] sm:$0xff]  }
 0x67e   : > { %v2603_v9 = vadd.f32 %v2598_v61, %v2523_v7  ;;  %v5343_v10 = vadd.f32 %v4624_v1, %v2602_v40  ;;  %v4300_v1 = vld [vmem:[%s5560_s9] ss:$8 sps:$4 sm:$0xff]   ;;  %v4349_v7 = vld [vmem:[%s5561_s10 + $0x50] sm:$0xff]  }
 0x67f   : > { %2874 = vmatpush1.bf16.msra.mxu1 %v4300_v1  ;;  %v4345_v61 = vld [vmem:[%s5561_s10 + $0x40] sm:$0xff]   ;;  %v4348_v40 = vld [vmem:[%s5561_s10 + $0x8] sm:$0xff]  }
 0x680   : > { %2607 = vadd.xlane.f32.xlu0 %v5343_v10  ;;  %v5347_v11 = vadd.f32 %v4627_v2, %v2603_v9  ;;  %v4305_v2 = vld [vmem:[%s5559_s8 + $0x14] ss:$8 sps:$4 sm:$0xff]   ;;  %2875 = vmatprep.subr.bf16.mxu1 %v4308_v13  ;;  %v4354_v1 = vld [vmem:[%s5561_s10 + $0x20] sm:$0xff]  }
 0x681   : > { %2736 = vmatprep.subr.bf16.mxu0 %v4305_v2  ;;  %v4351_v9 = vld [vmem:[%s5561_s10 + $0x58] sm:$0xff]   ;;  %v4356_v2 = vld [vmem:[%s5561_s10 + $0x28] sm:$0xff]   ;;  %v4357_v13 = vld [vmem:[%s5561_s10 + $0x70] sm:$0xff]  }
 0x682   : > { %2609 = vadd.xlane.f32.xlu1 %v5347_v11  ;;  %2737 = vmatpush1.bf16.msra.mxu0 %v4303_v14  ;;  %v4358_v14 = vld [vmem:[%s5561_s10 + $0x30] sm:$0xff]  }
 0x683   : > { %2876 = vmatpush1.bf16.msra.mxu1 %v4306_v19  ;;  %2738 = vmatprep.subr.bf16.mxu0 %v4311_v16  ;;  %v4359_v19 = vld [vmem:[%s5561_s10 + $0x78] sm:$0xff]  }
 0x684   : > { %2877 = vmatprep.subr.bf16.mxu1 %v4314_v44  ;;  %v4360_v16 = vld [vmem:[%s5561_s10 + $0x38] sm:$0xff]  }
 0x686   : > { %2739 = vmatpush1.bf16.msra.mxu0 %v4309_v17 }
 0x687   : > { %2878 = vmatpush1.bf16.msra.mxu1 %v4312_v58  ;;  %2740 = vmatprep.subr.bf16.mxu0 %v4317_v6 }
 0x688   : > { %2879 = vmatprep.subr.bf16.mxu1 %v4320_v27 }
 0x68a   : > { %2741 = vmatpush1.bf16.msra.mxu0 %v4315_v28 }
 0x68b   : > { %2880 = vmatpush1.bf16.msra.mxu1 %v4318_v5  ;;  %2742 = vmatprep.subr.bf16.mxu0 %v4323_v30 }
 0x68c   : > { %2881 = vmatprep.subr.bf16.mxu1 %v4326_v32 }
 0x68e   : > { %2743 = vmatpush1.bf16.msra.mxu0 %v4321_v29 }
 0x68f   : > { %2882 = vmatpush1.bf16.msra.mxu1 %v4324_v31  ;;  %2744 = vmatprep.subr.bf16.mxu0 %v4329_v34 }
 0x690   : > { %2883 = vmatprep.subr.bf16.mxu1 %v4332_v35 }
 0x692   : > { %2745 = vmatpush1.bf16.msra.mxu0 %v4327_v24 }
 0x693   : > { %2884 = vmatpush1.bf16.msra.mxu1 %v4330_v36  ;;  %2746 = vmatprep.subr.bf16.mxu0 %v4335_v25 }
 0x694   : > { %2885 = vmatprep.subr.bf16.mxu1 %v4338_v39 }
 0x696   : > { %2747 = vmatpush1.bf16.msra.mxu0 %v4333_v20 }
 0x697   : > { %2886 = vmatpush1.bf16.msra.mxu1 %v4336_v56  ;;  %2748 = vmatprep.subr.bf16.mxu0 %v4341_v26 }
 0x698   : > { %2887 = vmatprep.subr.bf16.mxu1 %v4344_v22 }
 0x69a   : > { %2749 = vmatpush1.bf16.msra.mxu0 %v4339_v45 }
 0x69b   : > { %2888 = vmatpush1.bf16.msra.mxu1 %v4342_v46  ;;  %3783 = vmatprep.subr.bf16.mxu0 %v4345_v61 }
 0x70d   : > { %v2608_v63 = vpop.xlane.xlu0 %2607 }
 0x70e   : > { %v2611_v3 = vmul.f32 0.0078125, %v2608_v63 }
 0x70f   : > { %v2610_v52 = vpop.xlane.xlu1 %2609 }
 0x710   : > { %v2613_v43 = vsub.f32 %v5343_v10, %v2611_v3  ;;  %v2612_v0 = vmul.f32 0.0078125, %v2610_v52 }
 0x712   : > { %v2614_v4 = vsub.f32 %v5347_v11, %v2612_v0  ;;  %v2615_v59 = vmul.f32 %v2613_v43, %v2613_v43 }
 0x714   : > { %2617 = vadd.xlane.f32.xlu0 %v2615_v59  ;;  %v2616_v37 = vmul.f32 %v2614_v4, %v2614_v4 }
 0x716   : > { %2619 = vadd.xlane.f32.xlu1 %v2616_v37 }
 0x7a1   : > { %v2618_v47 = vpop.xlane.xlu0 %2617 }
 0x7a2   : > { %v2621_v48 = vmul.f32 0.0078125, %v2618_v47 }
 0x7a3   : > { %v2620_v49 = vpop.xlane.xlu1 %2619 }
 0x7a4   : > { %v2623_v50 = vadd.f32 1e-05, %v2621_v48  ;;  %v2622_v18 = vmul.f32 0.0078125, %v2620_v49 }
 0x7a6   : > { %4429 = vrsqrt.f32 %v2623_v50  ;;  %v2624_v21 = vadd.f32 1e-05, %v2622_v18 }
 0x7a8   : > { %4431 = vrsqrt.f32 %v2624_v21 }
 0x7b0   : > { %v4430_v62 = vpop.eup %4429 }
 0x7b1   : > { %v2627_v23 = vmul.f32 %v4430_v62, %v2613_v43 }
 0x7b2   : > { %v4432_v51 = vpop.eup %4431 }
 0x7b3   : > { %v2628_v54 = vmul.f32 %v4432_v51, %v2614_v4  ;;  %v2635_v55 = vmul.f32 %v3527_v53, %v2627_v23 }
 0x7b5   : > { %v2636_v57 = vmul.f32 %v3527_v53, %v2628_v54 }
 0x7b7   : > { %v2637_v60 = vpack.c.bf16 %v2636_v57, %v2635_v55 }
 0x7b9   : > { %2767 = vmatmul.mubr.bf16.vlgmr.msra.gmra.mrb[44].mxu0 %v2637_v60  ;;  %2906 = vmatmul.mubr.bf16.vlgmr.msra.gmra.mrb[60].mxu1 %v2637_v60 }
 0x7ba   : > { %3784 = vmatpush3.bf16.msra.mxu0 %v4346_v33 }
 0x7bb   : > { %3785 = vmatprep.subr.bf16.mxu0 %v4347_v38 }
 0x7be   : > { %3786 = vmatpush3.bf16.msra.mxu0 %v4348_v40 }
 0x7bf   : > { %3787 = vmatprep.subr.bf16.mxu0 %v4349_v7 }
 0x7c2   : > { %3788 = vmatpush3.bf16.msra.mxu0 %v4350_v8 }
 0x7c3   : > { %3789 = vmatprep.subr.bf16.mxu0 %v4351_v9 }
 0x7c6   : > { %3790 = vmatpush3.bf16.msra.mxu0 %v4352_v41 }
 0x7c7   : > { %3791 = vmatprep.subr.bf16.mxu0 %v4353_v42 }
 0x7ca   : > { %3792 = vmatpush3.bf16.msra.mxu0 %v4354_v1 }
 0x7cb   : > { %3793 = vmatprep.subr.bf16.mxu0 %v4355_v12 }
 0x7ce   : > { %3794 = vmatpush3.bf16.msra.mxu0 %v4356_v2 }
 0x7cf   : > { %3795 = vmatprep.subr.bf16.mxu0 %v4357_v13 }
 0x7d2   : > { %3796 = vmatpush3.bf16.msra.mxu0 %v4358_v14 }
 0x7d3   : > { %3797 = vmatprep.subr.bf16.mxu0 %v4359_v19 }
 0x7d6   : > { %3798 = vmatpush3.bf16.msra.mxu0 %v4360_v16 }
 0x88c   : > { %v2768_v44 = vpop.f32.mrb[44].mxu0  ;;  %v2907_v17 = vpop.f32.mrb[60].mxu1 }
 0x88d   : > { %v2916_v58 = vmul.f32 %v2907_v17, %v2907_v17  ;;  %v2770_v63 = vpop.f32.mrb[45].mxu0  ;;  %v2909_v3 = vpop.f32.mrb[61].mxu1 }
 0x88e   : > { %v2917_v52 = vmul.f32 %v2909_v3, %v2909_v3  ;;  %v2772_v43 = vpop.f32.mrb[46].mxu0  ;;  %v2911_v0 = vpop.f32.mrb[62].mxu1 }
 0x88f   : > { %v2920_v4 = vmul.f32 %v2916_v58, %v2907_v17  ;;  %v2918_v59 = vmul.f32 %v2911_v0, %v2911_v0  ;;  %v2774_v37 = vpop.f32.mrb[47].mxu0  ;;  %v2913_v6 = vpop.f32.mrb[63].mxu1 }
 0x890   : > { %v2921_v27 = vmul.f32 %v2917_v52, %v2909_v3  ;;  %v2919_v28 = vmul.f32 %v2913_v6, %v2913_v6 }
 0x891   : > { %v2924_v5 = vmul.f32 0.044715, %v2920_v4  ;;  %v2922_v29 = vmul.f32 %v2918_v59, %v2911_v0 }
 0x892   : > { %v2925_v30 = vmul.f32 0.044715, %v2921_v27  ;;  %v2923_v31 = vmul.f32 %v2919_v28, %v2913_v6 }
 0x893   : > { %v2928_v32 = vadd.f32 %v2924_v5, %v2907_v17  ;;  %v2926_v34 = vmul.f32 0.044715, %v2922_v29 }
 0x894   : > { %v2929_v35 = vadd.f32 %v2925_v30, %v2909_v3  ;;  %v2927_v24 = vmul.f32 0.044715, %v2923_v31 }
 0x895   : > { %v2932_v36 = vmul.f32 0.7978846, %v2928_v32  ;;  %v2930_v25 = vadd.f32 %v2926_v34, %v2911_v0 }
 0x896   : > { %v2933_v39 = vmul.f32 0.7978846, %v2929_v35  ;;  %v2931_v15 = vadd.f32 %v2927_v24, %v2913_v6 }
 0x897   : > { %4433 = vtanh.f32 %v2932_v36  ;;  %v2934_v20 = vmul.f32 0.7978846, %v2930_v25 }
 0x898   : > { %4435 = vtanh.f32 %v2933_v39  ;;  %v2935_v56 = vmul.f32 0.7978846, %v2931_v15 }
 0x899   : > { %4437 = vtanh.f32 %v2934_v20 }
 0x89a   : > { %4439 = vtanh.f32 %v2935_v56 }
 0x8a1   : > { %v4434_v26 = vpop.eup %4433 }
 0x8a2   : > { %v4436_v22 = vpop.eup %4435  ;;  %v2940_v45 = vadd.f32 1.0, %v4434_v26 }
 0x8a3   : > { %v4438_v46 = vpop.eup %4437  ;;  %v2941_v47 = vadd.f32 1.0, %v4436_v22 }
 0x8a4   : > { %v4440_v48 = vpop.eup %4439  ;;  %v2944_v49 = vmul.f32 0.5, %v2940_v45  ;;  %v2942_v50 = vadd.f32 1.0, %v4438_v46 }
 0x8a5   : > { %v2945_v18 = vmul.f32 0.5, %v2941_v47  ;;  %v2943_v21 = vadd.f32 1.0, %v4440_v48 }
 0x8a6   : > { %v2948_v62 = vmul.f32 %v2944_v49, %v2907_v17  ;;  %v2946_v23 = vmul.f32 0.5, %v2942_v50 }
 0x8a7   : > { %v2949_v51 = vmul.f32 %v2945_v18, %v2909_v3  ;;  %v2947_v53 = vmul.f32 0.5, %v2943_v21 }
 0x8a8   : > { %v2952_v54 = vmul.f32 %v2948_v62, %v2768_v44  ;;  %v2950_v55 = vmul.f32 %v2946_v23, %v2911_v0 }
 0x8a9   : > { %v2951_v57 = vmul.f32 %v2947_v53, %v2913_v6  ;;  %v2953_v60 = vmul.f32 %v2949_v51, %v2770_v63 }
 0x8aa   : > { %v2954_v61 = vmul.f32 %v2950_v55, %v2772_v43 }
 0x8ab   : > { %v2955_v33 = vmul.f32 %v2951_v57, %v2774_v37 }
 0x8ac   : > { %v2956_v38 = vpack.c.bf16 %v2954_v61, %v2952_v54 }
 0x8ad   : > { %v2957_v40 = vpack.c.bf16 %v2955_v33, %v2953_v60 }
 0x8af   : > { %3118 = vmatprep.mubr.bf16.mxu0 %v2957_v40 }
 0x8b0   : > { %3119 = vmatmul.mubr.bf16.vlgmr.msra.gmra.mrb[48].mxu0 %v2956_v38 }
 0x983   : > { %v3799_v7 = vpop.f32.mrb[48].mxu0 }
 0x984   : > { %v3800_v8 = vpop.f32.mrb[49].mxu0 }
 0x985   : > { %v3801_v9 = vadd.f32 %v3800_v8, %v3799_v7  ;;  %v3802_v41 = vpop.f32.mrb[50].mxu0 }
 0x986   : > { %v3803_v42 = vpop.f32.mrb[51].mxu0 }
 0x987   : > { %v3804_v1 = vadd.f32 %v3803_v42, %v3802_v41  ;;  %v3127_v12 = vadd.f32 %v3801_v9, %v5343_v10 }
 0x989   : > { %v3128_v2 = vadd.f32 %v3804_v1, %v5347_v11 }
 0x98b   : > { %v3626_v13 = vpack.c.bf16 %v3128_v2, %v3127_v12 }
 0x98d   : > { %3627 = vst [vmem:[%s379_s24] sm:$0xff] %v3626_v13  }
 0x98e   : > { %4454 = shalt.err (!%p4451_p3)
}
 0x98f   : > { %s4455_s16 = scalar_lea.hbm %s5506_s13, 128  ;;  %s4459_s30 = scalar_lea.hbm %s5562_s11, 256 }
 0x990   : > { %p4456_p4 = scmp.ne.s32.totalorder %s5506_s13, %s4455_s16  ;;  %p4460_p9 = scmp.lt.u32.totalorder %s5506_s13, %s5562_s11 }
 0x991   : > { %p4461_p10 = scmp.lt.u32.totalorder %s4459_s30, %s4455_s16  ;;  %p4463_p12 = scmp.lt.u32.totalorder %s4455_s16, %s5506_s13 }
 0x992   : > { %p4457_p7 = pnand %p4456_p4, %p4609_p5 }
 0x993   : > { %p4462_p11 = por %p4461_p10, %p4460_p9 }
 0x994   : > { %p4458_p8 = pneg %p4457_p7 }
 0x995   : > { %p4464_p13 = por %p4463_p12, %p4462_p11 }
 0x997   : > { %p4465_p0 = pnand %p4464_p13, %p4458_p8 }
 0x999   : > { %4468 = shalt.err (!%p4465_p0)
}
 0x99a   : > { %s4509_s0 = smov 64   ;;  %s4510_s15 = smov 4  }
 0x99b   : > { %4141 = dma.vmem_to_hbm [thread:$0]  (%p4609_p5), %s5508_s25, 128, %s5506_s13, %s5510_s14, %s4509_s0, %s4509_s0, %s4510_s15  }
 0x99c PF: > { %p4147_p1 = scmp.ge.s32.totalorder %s4503_s20, 2  ;;  %s3168_s22 = sand.u32 1, %s4491_s17  }
 0x99d   : > { %s3169_s16 = scalar_lea.sflag [#allocation3], %s3168_s22 }
 0x99e   : > { %p4144_p2 = pnand %p4147_p1, %p4613_p6 }
 0x9a0   : > { %4486 = dma.done.wait (!%p4144_p2), %s3169_s16, 128  }
 0x9a1   : > { %4488 = vsyncadd (!%p4144_p2), %s3169_s16, 4294967168  ;;  %p21_p3 = scmp.ge.s32.totalorder %s4596_s23, 4   ;;  %s5567_s17 = smov %s4495_s18 }
 0x9a2   : > { %s5568_s18 = smov %s4499_s19  ;;  %s5569_s19 = smov %s4607_s26 }
 0x9a3   : > { %s5570_s20 = smov %s4596_s23  ;;  %23 = sbr.rel (!%p21_p3) target bundleno = 5 (0x5), region = 113 }
 0x9aa   :  { %3174 = vsyncpa [#allocation3], 1 }
 0x9ab   :  { %3176 = vsyncpa [#allocation3 + $0x1], 1 }

</bundles_post_ra>
